<compile_context>
chip_gen: v5e
topology: v5e:2x2
jax: 0.10.0
libtpu: 0.0.40
codegen_flags: <defaults>
</compile_context>

<pallas_src>
import jax
import jax.numpy as jnp
from jax.experimental import pallas as pl
from jax.experimental.pallas import tpu as pltpu


def gnn_kernel(x_ref, tri_ref, w1_ref, b1_ref, w2_ref, b2_ref, out_ref,
               carry1_ref, carry2_ref):
    i = pl.program_id(0)
    T = x_ref.shape[0]

    # Zero the carried prefix sums on the first tile.
    @pl.when(i == 0)
    def _():
        carry1_ref[...] = jnp.zeros_like(carry1_ref)
        carry2_ref[...] = jnp.zeros_like(carry2_ref)

    # Per-row GCN normalization factor 1/sqrt(global_row + 1).  (T,1) iota +
    # rsqrt per step is a single-vreg cost; everything bigger is hoisted.
    row_local = jax.lax.broadcasted_iota(jnp.int32, (T, 1), 0)
    gid = (row_local + i * T).astype(jnp.float32)
    dinv = jax.lax.rsqrt(gid + 1.0)                       # (T, 1)

    tri = tri_ref[...]                                    # resident (T, T) lower-tri ones

    # ---- GCNConv layer 1: h1 = relu( D^-1/2 * prefix_sum( D^-1/2 * (X @ W1) ) + b1 )
    xw = jnp.dot(x_ref[...], w1_ref[...], preferred_element_type=jnp.float32)
    s1 = xw * dinv
    p1 = jnp.dot(tri, s1, preferred_element_type=jnp.float32) + carry1_ref[...]
    carry1_ref[...] += jnp.sum(s1, axis=0, keepdims=True)  # running prefix for next tile
    h1 = jnp.maximum(p1 * dinv + b1_ref[...], 0.0)

    # ---- GCNConv layer 2 (W2 zero-padded to 128 lanes; b2 padded lanes = -1e30,
    #      which makes the padded classes vanish in log_softmax without a mask).
    hw = jnp.dot(h1, w2_ref[...], preferred_element_type=jnp.float32)
    s2 = hw * dinv
    p2 = jnp.dot(tri, s2, preferred_element_type=jnp.float32) + carry2_ref[...]
    carry2_ref[...] += jnp.sum(s2, axis=0, keepdims=True)
    h2 = p2 * dinv + b2_ref[...]

    # ---- log_softmax over the lane axis (padded lanes are already at -1e30).
    m = jnp.max(h2, axis=1, keepdims=True)
    s = h2 - m
    lse = jnp.log(jnp.sum(jnp.exp(s), axis=1, keepdims=True))
    out_ref[...] = s - lse                                # full-lane (unmasked) store


def gnn_forward(x, w1, b1, w2, b2, *, row_tile=256):
    x = x.astype(jnp.float32)
    n, in_c = x.shape
    hidden = w1.shape[1]
    out_c = w2.shape[1]
    out_pad = pl.cdiv(out_c, 128) * 128                   # lane-dense output width

    # Row tile: multiple of 8 (sublane), no larger than the padded node count.
    row_tile = min(row_tile, pl.cdiv(n, 8) * 8)
    row_tile = max(8, pl.cdiv(row_tile, 8) * 8)
    n_pad = pl.cdiv(n, row_tile) * row_tile
    if n_pad != n:
        # Padding rows sit at the end; the prefix sum is causal so they cannot
        # affect the first n rows.
        x = jnp.pad(x, ((0, n_pad - n), (0, 0)))

    w1 = w1.astype(jnp.float32)
    b1 = b1.astype(jnp.float32).reshape(1, hidden)
    w2_p = jnp.pad(w2.astype(jnp.float32), ((0, 0), (0, out_pad - out_c)))
    b2_f = b2.astype(jnp.float32).reshape(1, out_c)
    if out_pad > out_c:
        # -1e30 (not -inf) in the padded bias lanes: W2's padded columns are
        # zero, so this exactly reproduces the class mask inside log_softmax.
        b2_p = jnp.concatenate(
            [b2_f, jnp.full((1, out_pad - out_c), -1e30, dtype=jnp.float32)], axis=1)
    else:
        b2_p = b2_f

    # Hoisted lower-triangular ones matrix (built once, resident in VMEM).
    tri = jnp.tril(jnp.ones((row_tile, row_tile), dtype=jnp.float32))

    # TODO(synk): on v7x with large N, split the row range across the two
    # TensorCores (two-phase scan with a carry fix-up) instead of a single
    # sequential grid; irrelevant at N~200.
    out = pl.pallas_call(
        gnn_kernel,
        out_shape=jax.ShapeDtypeStruct((n_pad, out_pad), jnp.float32),
        grid_spec=pltpu.PrefetchScalarGridSpec(
            num_scalar_prefetch=0,
            grid=(n_pad // row_tile,),
            in_specs=[
                pl.BlockSpec((row_tile, in_c), lambda i: (i, 0)),       # streamed X rows
                pl.BlockSpec((row_tile, row_tile), lambda i: (0, 0)),   # resident tri
                pl.BlockSpec((in_c, hidden), lambda i: (0, 0)),         # resident W1
                pl.BlockSpec((1, hidden), lambda i: (0, 0)),            # resident b1
                pl.BlockSpec((hidden, out_pad), lambda i: (0, 0)),      # resident W2 (padded)
                pl.BlockSpec((1, out_pad), lambda i: (0, 0)),           # resident b2 (padded)
            ],
            out_specs=pl.BlockSpec((row_tile, out_pad), lambda i: (i, 0)),
            scratch_shapes=[
                pltpu.VMEM((1, hidden), jnp.float32),    # carried prefix, layer 1
                pltpu.VMEM((1, out_pad), jnp.float32),   # carried prefix, layer 2
            ],
        ),
        compiler_params=pltpu.CompilerParams(
            # Carried prefix sum across tiles -> the grid must run sequentially.
            dimension_semantics=("arbitrary",),
        ),
    )(x, tri, w1, b1, w2_p, b2_p)

    return out[:n, :out_c]


def build_normalized_adjacency(num_nodes):
    # Dense reference only (not used by the kernel): A[t,s]=1 for s<t plus
    # self-loops, symmetric in-degree normalization == PyG gcn_norm for the
    # torch.combinations edge set.
    idx = jnp.arange(num_nodes)
    adj = (idx[None, :] < idx[:, None]).astype(jnp.float32)
    adj = adj + jnp.eye(num_nodes, dtype=jnp.float32)
    dinv = 1.0 / jnp.sqrt(jnp.sum(adj, axis=1))
    return dinv[:, None] * adj * dinv[None, :]


def reference_forward(x, w1, b1, w2, b2):
    a = build_normalized_adjacency(x.shape[0])
    h1 = jnp.maximum(a @ (x @ w1) + b1, 0.0)
    h2 = a @ (h1 @ w2) + b2
    return jax.nn.log_softmax(h2, axis=1)


if __name__ == "__main__":
    # Small shapes implied by the module: N nodes, in_channels features,
    # hidden=16, out_channels classes.
    num_nodes = 200
    in_channels = 4
    hidden = 16
    out_channels = 3

    key = jax.random.PRNGKey(0)
    k_feat, k_w1, k_w2 = jax.random.split(key, 3)

    features = jax.random.normal(k_feat, (num_nodes, in_channels), dtype=jnp.float32)

    # Deterministic glorot-ish init; biases zero like PyG GCNConv default.
    w1 = jax.random.normal(k_w1, (in_channels, hidden), dtype=jnp.float32) * (
        (6.0 / (in_channels + hidden)) ** 0.5
    )
    b1 = jnp.zeros((1, hidden), dtype=jnp.float32)
    w2 = jax.random.normal(k_w2, (hidden, out_channels), dtype=jnp.float32) * (
        (6.0 / (hidden + out_channels)) ** 0.5
    )
    b2 = jnp.zeros((1, out_channels), dtype=jnp.float32)

    # row_tile=256 clamps to 200 -> a single sequential grid step for this size.
    out = gnn_forward(features, w1, b1, w2, b2, row_tile=256)
    out = jax.block_until_ready(out)

    # Validate against the dense-adjacency reference (same module semantics).
    ref = reference_forward(features, w1, b1, w2, b2)
    assert out.shape == (num_nodes, out_channels)
    assert bool(jnp.max(jnp.abs(out - ref)) < 1e-4)

    # sanity: each row of log_softmax output must sum (in prob space) to 1
    row_sums = jnp.sum(jnp.exp(out), axis=1)
    assert bool(jnp.all(jnp.abs(row_sums - 1.0) < 1e-4))

    # TODO(synk): for real throughput at these tiny channel widths, batch many
    # graphs along the lane/feature axis per call; a single 4/16/3-channel
    # graph is launch-overhead bound regardless of kernel micro-tuning.
    print("KERNEL_OK")
</pallas_src>

<mosaic_0001>
module attributes {stable_mosaic.version = 11 : i64} {
  func.func @gnn_kernel(%arg0: i32, %arg1: memref<200x4xf32, #tpu.memory_space<vmem>>, %arg2: memref<200x200xf32, #tpu.memory_space<vmem>>, %arg3: memref<4x16xf32, #tpu.memory_space<vmem>>, %arg4: memref<1x16xf32, #tpu.memory_space<vmem>>, %arg5: memref<16x128xf32, #tpu.memory_space<vmem>>, %arg6: memref<1x128xf32, #tpu.memory_space<vmem>>, %arg7: memref<200x128xf32, #tpu.memory_space<vmem>>, %arg8: memref<1x16xf32, #tpu.memory_space<vmem>>, %arg9: memref<1x128xf32, #tpu.memory_space<vmem>>) attributes {dimension_semantics = [#tpu.dimension_semantics<arbitrary>], iteration_bounds = array<i64: 1>, scalar_prefetch = 0 : i64, scratch_operands = 2 : i64, tpu.core_type = #tpu.core_type<tc>, window_params = [{transform_indices = @transform_0, window_bounds = array<i64: 200, 4>}, {pipeline_mode = #tpu.pipeline_mode<synchronous>, transform_indices = @transform_1, window_bounds = array<i64: 200, 200>}, {pipeline_mode = #tpu.pipeline_mode<synchronous>, transform_indices = @transform_2, window_bounds = array<i64: 4, 16>}, {pipeline_mode = #tpu.pipeline_mode<synchronous>, transform_indices = @transform_3, window_bounds = array<i64: 1, 16>}, {pipeline_mode = #tpu.pipeline_mode<synchronous>, transform_indices = @transform_4, window_bounds = array<i64: 16, 128>}, {pipeline_mode = #tpu.pipeline_mode<synchronous>, transform_indices = @transform_5, window_bounds = array<i64: 1, 128>}, {transform_indices = @transform_6, window_bounds = array<i64: 200, 128>}]} {
    %c0_i32 = arith.constant 0 : i32
    %0 = arith.cmpi eq, %arg0, %c0_i32 : i32
    %1 = arith.extui %0 : i1 to i32
    %c0_i32_0 = arith.constant 0 : i32
    %2 = arith.cmpi ne, %1, %c0_i32_0 : i32
    scf.if %2 {
      %cst_35 = arith.constant 0.000000e+00 : f32
      %62 = vector.broadcast %cst_35 : f32 to vector<1x16xf32>
      %c0_36 = arith.constant 0 : index
      %c0_37 = arith.constant 0 : index
      %63 = vector.load %arg8[%c0_36, %c0_37] : memref<1x16xf32, #tpu.memory_space<vmem>>, vector<1x16xf32>
      tpu.vector_store %arg8[%c0_36, %c0_37], %62 {strides = array<i32>} : memref<1x16xf32, #tpu.memory_space<vmem>>, vector<1x16xf32>,
      %cst_38 = arith.constant 0.000000e+00 : f32
      %64 = vector.broadcast %cst_38 : f32 to vector<1x128xf32>
      %c0_39 = arith.constant 0 : index
      %c0_40 = arith.constant 0 : index
      %65 = vector.load %arg9[%c0_39, %c0_40] : memref<1x128xf32, #tpu.memory_space<vmem>>, vector<1x128xf32>
      tpu.vector_store %arg9[%c0_39, %c0_40], %64 {strides = array<i32>} : memref<1x128xf32, #tpu.memory_space<vmem>>, vector<1x128xf32>,
    } else {
    }
    %3 = tpu.iota {dimensions = array<i32: 0>} : vector<200x1xi32>
    %c200_i32 = arith.constant 200 : i32
    %4 = arith.muli %arg0, %c200_i32 : i32
    %5 = vector.broadcast %4 : i32 to vector<200x1xi32>
    %6 = arith.addi %3, %5 : vector<200x1xi32>
    %7 = arith.sitofp %6 : vector<200x1xi32> to vector<200x1xf32>
    %cst = arith.constant 1.000000e+00 : f32
    %8 = vector.broadcast %cst : f32 to vector<200x1xf32>
    %9 = arith.addf %7, %8 : vector<200x1xf32>
    %10 = math.rsqrt %9 : vector<200x1xf32>
    %c0 = arith.constant 0 : index
    %c0_1 = arith.constant 0 : index
    %11 = vector.load %arg2[%c0, %c0_1] : memref<200x200xf32, #tpu.memory_space<vmem>>, vector<200x200xf32>
    %c0_2 = arith.constant 0 : index
    %c0_3 = arith.constant 0 : index
    %12 = vector.load %arg1[%c0_2, %c0_3] : memref<200x4xf32, #tpu.memory_space<vmem>>, vector<200x4xf32>
    %c0_4 = arith.constant 0 : index
    %c0_5 = arith.constant 0 : index
    %13 = vector.load %arg3[%c0_4, %c0_5] : memref<4x16xf32, #tpu.memory_space<vmem>>, vector<4x16xf32>
    %cst_6 = arith.constant dense<0.000000e+00> : vector<200x16xf32>
    %14 = tpu.matmul %12, %13, %cst_6 {dimension_numbers = #tpu.dot_dimension_numbers<[1], [0], [0], [1], [0, 0, 1, 1], [], []>} : vector<200x4xf32>, vector<4x16xf32>, vector<200x16xf32> -> vector<200x16xf32>
    %15 = vector.broadcast %10 : vector<200x1xf32> to vector<200x16xf32>
    %16 = arith.mulf %14, %15 : vector<200x16xf32>
    %cst_7 = arith.constant dense<0.000000e+00> : vector<200x16xf32>
    %17 = tpu.matmul %11, %16, %cst_7 {dimension_numbers = #tpu.dot_dimension_numbers<[1], [0], [0], [1], [0, 0, 1, 1], [], []>} : vector<200x200xf32>, vector<200x16xf32>, vector<200x16xf32> -> vector<200x16xf32>
    %c0_8 = arith.constant 0 : index
    %c0_9 = arith.constant 0 : index
    %18 = vector.load %arg8[%c0_8, %c0_9] : memref<1x16xf32, #tpu.memory_space<vmem>>, vector<1x16xf32>
    %19 = vector.broadcast %18 : vector<1x16xf32> to vector<200x16xf32>
    %20 = arith.addf %17, %19 : vector<200x16xf32>
    %c0_10 = arith.constant 0 : index
    %c0_11 = arith.constant 0 : index
    %21 = vector.load %arg8[%c0_10, %c0_11] : memref<1x16xf32, #tpu.memory_space<vmem>>, vector<1x16xf32>
    %cst_12 = arith.constant dense<0.000000e+00> : vector<16xf32>
    %22 = vector.multi_reduction <add>, %16, %cst_12 [0] : vector<200x16xf32> to vector<16xf32>
    %23 = vector.shape_cast %22 : vector<16xf32> to vector<1x16xf32>
    %24 = arith.addf %21, %23 : vector<1x16xf32>
    %c0_13 = arith.constant 0 : index
    %c0_14 = arith.constant 0 : index
    %25 = vector.load %arg8[%c0_13, %c0_14] : memref<1x16xf32, #tpu.memory_space<vmem>>, vector<1x16xf32>
    tpu.vector_store %arg8[%c0_13, %c0_14], %24 {strides = array<i32>} : memref<1x16xf32, #tpu.memory_space<vmem>>, vector<1x16xf32>,
    %26 = vector.broadcast %10 : vector<200x1xf32> to vector<200x16xf32>
    %27 = arith.mulf %20, %26 : vector<200x16xf32>
    %c0_15 = arith.constant 0 : index
    %c0_16 = arith.constant 0 : index
    %28 = vector.load %arg4[%c0_15, %c0_16] : memref<1x16xf32, #tpu.memory_space<vmem>>, vector<1x16xf32>
    %29 = vector.broadcast %28 : vector<1x16xf32> to vector<200x16xf32>
    %30 = arith.addf %27, %29 : vector<200x16xf32>
    %cst_17 = arith.constant 0.000000e+00 : f32
    %31 = vector.broadcast %cst_17 : f32 to vector<200x16xf32>
    %32 = arith.maximumf %30, %31 : vector<200x16xf32>
    %c0_18 = arith.constant 0 : index
    %c0_19 = arith.constant 0 : index
    %33 = vector.load %arg5[%c0_18, %c0_19] : memref<16x128xf32, #tpu.memory_space<vmem>>, vector<16x128xf32>
    %cst_20 = arith.constant dense<0.000000e+00> : vector<200x128xf32>
    %34 = tpu.matmul %32, %33, %cst_20 {dimension_numbers = #tpu.dot_dimension_numbers<[1], [0], [0], [1], [0, 0, 1, 1], [], []>} : vector<200x16xf32>, vector<16x128xf32>, vector<200x128xf32> -> vector<200x128xf32>
    %35 = vector.broadcast %10 : vector<200x1xf32> to vector<200x128xf32>
    %36 = arith.mulf %34, %35 : vector<200x128xf32>
    %cst_21 = arith.constant dense<0.000000e+00> : vector<200x128xf32>
    %37 = tpu.matmul %11, %36, %cst_21 {dimension_numbers = #tpu.dot_dimension_numbers<[1], [0], [0], [1], [0, 0, 1, 1], [], []>} : vector<200x200xf32>, vector<200x128xf32>, vector<200x128xf32> -> vector<200x128xf32>
    %c0_22 = arith.constant 0 : index
    %c0_23 = arith.constant 0 : index
    %38 = vector.load %arg9[%c0_22, %c0_23] : memref<1x128xf32, #tpu.memory_space<vmem>>, vector<1x128xf32>
    %39 = vector.broadcast %38 : vector<1x128xf32> to vector<200x128xf32>
    %40 = arith.addf %37, %39 : vector<200x128xf32>
    %c0_24 = arith.constant 0 : index
    %c0_25 = arith.constant 0 : index
    %41 = vector.load %arg9[%c0_24, %c0_25] : memref<1x128xf32, #tpu.memory_space<vmem>>, vector<1x128xf32>
    %cst_26 = arith.constant dense<0.000000e+00> : vector<128xf32>
    %42 = vector.multi_reduction <add>, %36, %cst_26 [0] : vector<200x128xf32> to vector<128xf32>
    %43 = vector.shape_cast %42 : vector<128xf32> to vector<1x128xf32>
    %44 = arith.addf %41, %43 : vector<1x128xf32>
    %c0_27 = arith.constant 0 : index
    %c0_28 = arith.constant 0 : index
    %45 = vector.load %arg9[%c0_27, %c0_28] : memref<1x128xf32, #tpu.memory_space<vmem>>, vector<1x128xf32>
    tpu.vector_store %arg9[%c0_27, %c0_28], %44 {strides = array<i32>} : memref<1x128xf32, #tpu.memory_space<vmem>>, vector<1x128xf32>,
    %46 = vector.broadcast %10 : vector<200x1xf32> to vector<200x128xf32>
    %47 = arith.mulf %40, %46 : vector<200x128xf32>
    %c0_29 = arith.constant 0 : index
    %c0_30 = arith.constant 0 : index
    %48 = vector.load %arg6[%c0_29, %c0_30] : memref<1x128xf32, #tpu.memory_space<vmem>>, vector<1x128xf32>
    %49 = vector.broadcast %48 : vector<1x128xf32> to vector<200x128xf32>
    %50 = arith.addf %47, %49 : vector<200x128xf32>
    %cst_31 = arith.constant dense<0xFF800000> : vector<200xf32>
    %51 = vector.multi_reduction <maximumf>, %50, %cst_31 [1] : vector<200x128xf32> to vector<200xf32>
    %52 = vector.shape_cast %51 : vector<200xf32> to vector<200x1xf32>
    %53 = vector.broadcast %52 : vector<200x1xf32> to vector<200x128xf32>
    %54 = arith.subf %50, %53 : vector<200x128xf32>
    %55 = math.exp %54 : vector<200x128xf32>
    %cst_32 = arith.constant dense<0.000000e+00> : vector<200xf32>
    %56 = vector.multi_reduction <add>, %55, %cst_32 [1] : vector<200x128xf32> to vector<200xf32>
    %57 = vector.shape_cast %56 : vector<200xf32> to vector<200x1xf32>
    %58 = math.log %57 : vector<200x1xf32>
    %59 = vector.broadcast %58 : vector<200x1xf32> to vector<200x128xf32>
    %60 = arith.subf %54, %59 : vector<200x128xf32>
    %c0_33 = arith.constant 0 : index
    %c0_34 = arith.constant 0 : index
    %61 = vector.load %arg7[%c0_33, %c0_34] : memref<200x128xf32, #tpu.memory_space<vmem>>, vector<200x128xf32>
    tpu.vector_store %arg7[%c0_33, %c0_34], %60 {strides = array<i32>} : memref<200x128xf32, #tpu.memory_space<vmem>>, vector<200x128xf32>,
    return
  }
  func.func @transform_0(%arg0: i32) -> (i32, i32) {
    %c0_i32 = arith.constant 0 : i32
    %c0_i32_0 = arith.constant 0 : i32
    return %arg0, %c0_i32 : i32, i32
  }
  func.func @transform_1(%arg0: i32) -> (i32, i32) {
    %c0_i32 = arith.constant 0 : i32
    %c0_i32_0 = arith.constant 0 : i32
    %c0_i32_1 = arith.constant 0 : i32
    return %c0_i32, %c0_i32_0 : i32, i32
  }
  func.func @transform_2(%arg0: i32) -> (i32, i32) {
    %c0_i32 = arith.constant 0 : i32
    %c0_i32_0 = arith.constant 0 : i32
    %c0_i32_1 = arith.constant 0 : i32
    return %c0_i32, %c0_i32_0 : i32, i32
  }
  func.func @transform_3(%arg0: i32) -> (i32, i32) {
    %c0_i32 = arith.constant 0 : i32
    %c0_i32_0 = arith.constant 0 : i32
    %c0_i32_1 = arith.constant 0 : i32
    return %c0_i32, %c0_i32_0 : i32, i32
  }
  func.func @transform_4(%arg0: i32) -> (i32, i32) {
    %c0_i32 = arith.constant 0 : i32
    %c0_i32_0 = arith.constant 0 : i32
    %c0_i32_1 = arith.constant 0 : i32
    return %c0_i32, %c0_i32_0 : i32, i32
  }
  func.func @transform_5(%arg0: i32) -> (i32, i32) {
    %c0_i32 = arith.constant 0 : i32
    %c0_i32_0 = arith.constant 0 : i32
    %c0_i32_1 = arith.constant 0 : i32
    return %c0_i32, %c0_i32_0 : i32, i32
  }
  func.func @transform_6(%arg0: i32) -> (i32, i32) {
    %c0_i32 = arith.constant 0 : i32
    %c0_i32_0 = arith.constant 0 : i32
    return %arg0, %c0_i32 : i32, i32
  }
}

</mosaic_0001>

<bundles_post_ra>
// kernel: tpu_custom_call.1
= control target key start
LH: loop header
LB: loop body
LE: loop exit
PB: predicated region body
PF: predicated region fallthrough
CT: control target
= control target key end

     0   :  { %11 = vsyncpa [#allocation5], 0  ;;  %s3665_s0 = inlined_call_operand.vmem [shape: f32[200,4], index: 0, kind: input, shape index: {}]   ;;  %s3666_s1 = inlined_call_operand.hbm [shape: f32[200,200], index: 1, kind: input, shape index: {}]   ;;  %s3667_s2 = inlined_call_operand.vmem [shape: f32[4,16], index: 2, kind: input, shape index: {}]   ;;  %s3668_s3 = inlined_call_operand.vmem [shape: f32[1,16], index: 3, kind: input, shape index: {}]   ;;  %s3669_s4 = inlined_call_operand.vmem [shape: f32[16,128], index: 4, kind: input, shape index: {}]   ;;  %s3670_s5 = inlined_call_operand.vmem [shape: f32[1,128], index: 5, kind: input, shape index: {}]   ;;  %s3671_s6 = inlined_call_operand.hbm [shape: f32[200,128], index: 6, kind: output, shape index: {}]  }
   0x1   :  { %12 = vsyncpa [#allocation6], 0  ;;  %s19_s23 = sshll.u32 %s3666_s1, 4  ;;  %s2156_s24 = smov [#allocation4]   ;;  %s20_s23 = int_to_ptr.hbm [resolvable:$true] %s19_s23 }
   0x2   :  { %s21_s25 = sshll.u32 %s2156_s24, 4  ;;  %s2157_s26 = smov 256   ;;  %s22_s25 = int_to_ptr.vmem [resolvable:$true] %s21_s25 }
   0x3   :  { %s2158_s27 = smov 16  }
   0x4   :  { %27 = dma.hbm_to_vmem [thread:$0]  %s20_s23, 6400, %s22_s25, [#allocation5], %s2157_s26, %s2157_s26, %s2158_s27  }
   0x5   :  { %2152 = dma.done.wait [#allocation5], 6400  }
   0x6   :  { %2153 = vsyncadd [#allocation5], 4294960896  ;;  %vm552_vm0 = vcmask 1043456   ;;  %vm476_vm1 = vcmask 31744   ;;  %v475_v0 = vld [vmem:[%s3667_s2] sm:$0xf]  ;;  %v47_v25 = vlaneseq }
   0x7   :  { %v450_v1 = vld [vmem:[%s3665_s0] sm:$0xff]  ;;  %v463_v2 = vld [vmem:[%s3665_s0 + $0x68] sm:$0xff]  ;;  %1837 = vmatpush.msk.msra.mxu0 %vm552_vm0, %v475_v0  ;;  %1938 = vmatpush.msk.msra.mxu1 %vm552_vm0, %v475_v0  ;;  %v464_v4 = vld [vmem:[%s3665_s0 + $0x70] sm:$0xff]  ;;  %s1824_s11 = sshll.u32 %s3671_s6, 4  ;;  %s2161_s2 = smov 128   ;;  %s1825_s11 = int_to_ptr.hbm [resolvable:$true] %s1824_s11 }
   0x8   :  { %1838 = vmatmul.msk.f32.vlgmr.msra.gmra.mxu0 %vm476_vm1, %v450_v1  ;;  %1851 = vmatmul.msk.f32.vlgmr.msra.gmra.mxu1 %vm476_vm1, %v463_v2  ;;  %v451_v3 = vld [vmem:[%s3665_s0 + $0x8] sm:$0xff]  ;;  %v452_v5 = vld [vmem:[%s3665_s0 + $0x10] sm:$0xff]  ;;  %v465_v6 = vld [vmem:[%s3665_s0 + $0x78] sm:$0xff]  ;;  %v2303_v27 = vshrl.u32 %v47_v25, 7  ;;  %s2162_s12 = smov 8  }
   0x9   :  { %v453_v7 = vld [vmem:[%s3665_s0 + $0x18] sm:$0xff]  ;;  %v466_v8 = vld [vmem:[%s3665_s0 + $0x80] sm:$0xff]  ;;  %v467_v10 = vld [vmem:[%s3665_s0 + $0x88] sm:$0xff] }
   0xa   :  { %v454_v9 = vld [vmem:[%s3665_s0 + $0x20] sm:$0xff]  ;;  %v455_v11 = vld [vmem:[%s3665_s0 + $0x28] sm:$0xff]  ;;  %v468_v12 = vld [vmem:[%s3665_s0 + $0x90] sm:$0xff]  ;;  %v63_v28 = vadd.s32 120, %v2303_v27  ;;  %v62_v29 = vadd.s32 112, %v2303_v27  ;;  %v61_v32 = vadd.s32 104, %v2303_v27  ;;  %v100_v48 = vcvt.s32.f32 %v2303_v27 }
   0xb   :  { %v456_v13 = vld [vmem:[%s3665_s0 + $0x30] sm:$0xff]  ;;  %v469_v14 = vld [vmem:[%s3665_s0 + $0x98] sm:$0xff]  ;;  %v470_v16 = vld [vmem:[%s3665_s0 + $0xa0] sm:$0xff]  ;;  %v49_v47 = vadd.s32 8, %v2303_v27  ;;  %v50_v49 = vadd.s32 16, %v2303_v27  ;;  %v52_v2 = vadd.s32 32, %v2303_v27 }
   0xc   :  { %v457_v15 = vld [vmem:[%s3665_s0 + $0x38] sm:$0xff]  ;;  %v458_v17 = vld [vmem:[%s3665_s0 + $0x40] sm:$0xff]  ;;  %v471_v18 = vld [vmem:[%s3665_s0 + $0xa8] sm:$0xff]  ;;  %v115_v30 = vcvt.s32.f32 %v63_v28  ;;  %v114_v31 = vcvt.s32.f32 %v62_v29  ;;  %v113_v35 = vcvt.s32.f32 %v61_v32  ;;  %v2314_v54 = vadd.f32 1.0, %v100_v48 }
   0xd   :  { %v459_v19 = vld [vmem:[%s3665_s0 + $0x48] sm:$0xff]  ;;  %v472_v20 = vld [vmem:[%s3665_s0 + $0xb0] sm:$0xff]  ;;  %v473_v22 = vld [vmem:[%s3665_s0 + $0xb8] sm:$0xff]  ;;  %v101_v53 = vcvt.s32.f32 %v49_v47  ;;  %v102_v55 = vcvt.s32.f32 %v50_v49 }
   0xe   :  { %v460_v21 = vld [vmem:[%s3665_s0 + $0x50] sm:$0xff]  ;;  %v461_v23 = vld [vmem:[%s3665_s0 + $0x58] sm:$0xff]  ;;  %v474_v24 = vld [vmem:[%s3665_s0 + $0xc0] sm:$0xff]  ;;  %v140_v33 = vadd.f32 1.0, %v115_v30  ;;  %v139_v34 = vadd.f32 1.0, %v114_v31  ;;  %v138_v36 = vadd.f32 1.0, %v113_v35  ;;  %vm156_vm11 = vweird.f32 %v2314_v54 }
   0xf   :  { %v462_v26 = vld [vmem:[%s3665_s0 + $0x60] sm:$0xff]  ;;  %v2318_v61 = vadd.f32 1.0, %v101_v53  ;;  %v2321_v62 = vadd.f32 1.0, %v102_v55  ;;  %v54_v35 = vadd.s32 48, %v2303_v27  ;;  %v56_v53 = vadd.s32 64, %v2303_v27 }
  0x10   :  { %1839 = vmatmul.msk.f32.gmra.mxu0 %vm476_vm1, %v451_v3  ;;  %1852 = vmatmul.msk.f32.gmra.mxu1 %vm476_vm1, %v464_v4  ;;  %1954 = vrsqrt.f32 %v140_v33  ;;  %vm306_vm2 = vweird.f32 %v140_v33  ;;  %vm296_vm4 = vweird.f32 %v139_v34  ;;  %vm286_vm8 = vweird.f32 %v138_v36 }
  0x11   :  { %1956 = vrsqrt.f32 %v139_v34  ;;  %vm166_vm13 = vweird.f32 %v2318_v61  ;;  %vm176_vm15 = vweird.f32 %v2321_v62 }
  0x12   :  { %1958 = vrsqrt.f32 %v138_v36 }
  0x13   :  { %1960 = vrsqrt.f32 %v2314_v54 }
  0x14   :  { %1962 = vrsqrt.f32 %v2318_v61 }
  0x15   :  { %1964 = vrsqrt.f32 %v2321_v62 }
  0x16   :  { %v1955_v37 = vpop.eup %1954 }
  0x17   :  { %v1957_v38 = vpop.eup %1956  ;;  %v301_v39 = vmul.f32 %v1955_v37, %v140_v33  ;;  %vm307_vm3 = vweird.f32 %v1955_v37  ;;  %v65_v33 = vadd.s32 136, %v2303_v27 }
  0x18   :  { %1840 = vmatmul.msk.f32.gmra.mxu0 %vm476_vm1, %v452_v5  ;;  %1853 = vmatmul.msk.f32.gmra.mxu1 %vm476_vm1, %v465_v6  ;;  %v291_v40 = vmul.f32 %v1957_v38, %v139_v34  ;;  %v1959_v41 = vpop.eup %1958  ;;  %vm297_vm5 = vweird.f32 %v1957_v38  ;;  %vm308_vm6 = vmor %vm306_vm2, %vm307_vm3 }
  0x19   :  { %v302_v42 = vmul.f32 %v1955_v37, %v301_v39  ;;  %v281_v44 = vmul.f32 %v1959_v41, %v138_v36  ;;  %vm298_vm7 = vmor %vm296_vm4, %vm297_vm5  ;;  %vm287_vm9 = vweird.f32 %v1959_v41  ;;  %v2326_v3 = vpop.eup %1960  ;;  %v117_v39 = vcvt.s32.f32 %v65_v33 }
  0x1a   :  { %v292_v43 = vmul.f32 %v1957_v38, %v291_v40  ;;  %vm288_vm10 = vmor %vm286_vm8, %vm287_vm9  ;;  %vm157_vm12 = vweird.f32 %v2326_v3  ;;  %v69_v33 = vadd.s32 168, %v2303_v27 }
  0x1b   :  { %v303_v50 = vmul.f32 0.5, %v302_v42  ;;  %v282_v52 = vmul.f32 %v1959_v41, %v281_v44  ;;  %v66_v42 = vadd.s32 144, %v2303_v27 }
  0x1c   :  { %v293_v51 = vmul.f32 0.5, %v292_v43  ;;  %v106_v43 = vcvt.s32.f32 %v54_v35 }
  0x1d   :  { %v304_v56 = vsub.f32 1.5, %v303_v50  ;;  %v283_v58 = vmul.f32 0.5, %v282_v52  ;;  %v55_v50 = vadd.s32 56, %v2303_v27  ;;  %v2396_v52 = vadd.f32 1.0, %v117_v39 }
  0x1e   :  { %v294_v57 = vsub.f32 1.5, %v293_v51 }
  0x1f   :  { %v305_v63 = vmul.f32 %v1955_v37, %v304_v56  ;;  %v284_v1 = vsub.f32 1.5, %v283_v58  ;;  %v2401_v58 = vadd.f32 1.0, %v106_v43 }
  0x20   :  { %1841 = vmatmul.msk.f32.gmra.mxu0 %vm476_vm1, %v453_v7  ;;  %1854 = vmatmul.msk.f32.gmra.mxu1 %vm476_vm1, %v466_v8  ;;  %v295_v0 = vmul.f32 %v1957_v38, %v294_v57  ;;  %v51_v7 = vadd.s32 24, %v2303_v27  ;;  %v64_v8 = vadd.s32 128, %v2303_v27  ;;  %v118_v57 = vcvt.s32.f32 %v66_v42 }
  0x21   :  { %v2328_v4 = vsel %vm308_vm6, %v1955_v37, %v305_v63  ;;  %v285_v6 = vmul.f32 %v1959_v41, %v284_v1  ;;  %vm937_vm6 = vcmask 130048  }
  0x22   :  { %3739 = vst [vmem:[#allocation10_spill] sm:$0xff] %v2328_v4  ;;  %v2330_v5 = vsel %vm298_vm7, %v1957_v38, %v295_v0 }
  0x23   :  { %3740 = vst [vmem:[#allocation11_spill] sm:$0xff] %v2330_v5 }
  0x28   :  { %1842 = vmatmul.msk.f32.gmra.mxu0 %vm476_vm1, %v454_v9  ;;  %1855 = vmatmul.msk.f32.gmra.mxu1 %vm476_vm1, %v467_v10 }
  0x30   :  { %1843 = vmatmul.msk.f32.gmra.mxu0 %vm476_vm1, %v455_v11  ;;  %1856 = vmatmul.msk.f32.gmra.mxu1 %vm476_vm1, %v468_v12 }
  0x38   :  { %1844 = vmatmul.msk.f32.gmra.mxu0 %vm476_vm1, %v456_v13  ;;  %1857 = vmatmul.msk.f32.gmra.mxu1 %vm476_vm1, %v469_v14  ;;  %v104_v13 = vcvt.s32.f32 %v52_v2  ;;  %v151_v14 = vmul.f32 %v2326_v3, %v2314_v54  ;;  %v67_v2 = vadd.s32 152, %v2303_v27 }
  0x40   :  { %1845 = vmatmul.msk.f32.gmra.mxu0 %vm476_vm1, %v457_v15  ;;  %1858 = vmatmul.msk.f32.gmra.mxu1 %vm476_vm1, %v470_v16  ;;  %v2344_v15 = vpop.eup %1962  ;;  %v2346_v16 = vsel %vm288_vm10, %v1959_v41, %v285_v6  ;;  %v107_v6 = vcvt.s32.f32 %v55_v50  ;;  %v72_v50 = vadd.s32 192, %v2303_v27 }
  0x41   :  { %3743 = vst [vmem:[#allocation14_spill] sm:$0xff] %v2346_v16  ;;  %v161_v25 = vmul.f32 %v2344_v15, %v2318_v61  ;;  %vm167_vm14 = vweird.f32 %v2344_v15  ;;  %v119_v61 = vcvt.s32.f32 %v67_v2 }
  0x42   :  { %vm168_vm2 = vmor %vm166_vm13, %vm167_vm14  ;;  %vm216_vm14 = vweird.f32 %v2401_v58 }
  0x43   :  { %v162_v34 = vmul.f32 %v2344_v15, %v161_v25 }
  0x45   :  { %v163_v40 = vmul.f32 0.5, %v162_v34 }
  0x47   :  { %v164_v56 = vsub.f32 1.5, %v163_v40 }
  0x48   :  { %1846 = vmatmul.msk.f32.gmra.mxu0 %vm476_vm1, %v458_v17  ;;  %1859 = vmatmul.msk.f32.gmra.mxu1 %vm476_vm1, %v471_v18  ;;  %v103_v17 = vcvt.s32.f32 %v51_v7  ;;  %v2348_v18 = vpop.eup %1964  ;;  %v108_v7 = vcvt.s32.f32 %v56_v53  ;;  %v2469_v53 = vadd.f32 1.0, %v119_v61 }
  0x49   :  { %v171_v29 = vmul.f32 %v2348_v18, %v2321_v62  ;;  %vm177_vm0 = vweird.f32 %v2348_v18 }
  0x4a   :  { %vm178_vm3 = vmor %vm176_vm15, %vm177_vm0  ;;  %v2448_v34 = vadd.f32 1.0, %v108_v7  ;;  %v70_v7 = vadd.s32 176, %v2303_v27 }
  0x4b   :  { %v172_v37 = vmul.f32 %v2348_v18, %v171_v29  ;;  %v2442_v29 = vadd.f32 1.0, %v107_v6 }
  0x4d   :  { %v173_v44 = vmul.f32 0.5, %v172_v37  ;;  %vm226_vm0 = vweird.f32 %v2442_v29 }
  0x50   :  { %1847 = vmatmul.msk.f32.gmra.mxu0 %vm476_vm1, %v459_v19  ;;  %1860 = vmatmul.msk.f32.gmra.mxu1 %vm476_vm1, %v472_v20  ;;  %v116_v19 = vcvt.s32.f32 %v64_v8  ;;  %v53_v20 = vadd.s32 40, %v2303_v27 }
  0x52   :  { %v105_v28 = vcvt.s32.f32 %v53_v20 }
  0x54   :  { %v2378_v36 = vadd.f32 1.0, %v105_v28  ;;  %v68_v28 = vadd.s32 160, %v2303_v27 }
  0x56   :  { %vm206_vm9 = vweird.f32 %v2378_v36 }
  0x58   :  { %1848 = vmatmul.msk.f32.gmra.mxu0 %vm476_vm1, %v460_v21  ;;  %1861 = vmatmul.msk.f32.gmra.mxu1 %vm476_vm1, %v473_v22  ;;  %v2356_v22 = vadd.f32 1.0, %v104_v13  ;;  %v2420_v13 = vadd.f32 1.0, %v118_v57 }
  0x5a   :  { %1966 = vrsqrt.f32 %v2356_v22  ;;  %vm196_vm4 = vweird.f32 %v2356_v22 }
  0x60   :  { %1849 = vmatmul.msk.f32.gmra.mxu0 %vm476_vm1, %v461_v23  ;;  %1862 = vmatmul.msk.f32.gmra.mxu1 %vm476_vm1, %v474_v24  ;;  %v152_v23 = vmul.f32 %v2326_v3, %v151_v14  ;;  %v2359_v24 = vadd.f32 1.0, %v103_v17  ;;  %v2381_v41 = vpop.eup %1966  ;;  %v57_v14 = vadd.s32 72, %v2303_v27 }
  0x61   :  { %v191_v55 = vmul.f32 %v2381_v41, %v2356_v22  ;;  %vm197_vm5 = vweird.f32 %v2381_v41 }
  0x62   :  { %v153_v32 = vmul.f32 0.5, %v152_v23  ;;  %1968 = vrsqrt.f32 %v2359_v24  ;;  %v109_v62 = vcvt.s32.f32 %v57_v14  ;;  %v124_v14 = vcvt.s32.f32 %v72_v50 }
  0x63   :  { %v192_v8 = vmul.f32 %v2381_v41, %v191_v55  ;;  %v59_v55 = vadd.s32 88, %v2303_v27  ;;  %vm186_vm7 = vweird.f32 %v2359_v24 }
  0x64   :  { %v154_v38 = vsub.f32 1.5, %v153_v32 }
  0x65   :  { %v193_v35 = vmul.f32 0.5, %v192_v8 }
  0x66   :  { %v155_v51 = vmul.f32 %v2326_v3, %v154_v38  ;;  %v58_v38 = vadd.s32 80, %v2303_v27 }
  0x68   :  { %1850 = vmatmul.msk.f32.gmra.mxu0 %vm476_vm1, %v462_v26  ;;  %v2364_v26 = vadd.f32 1.0, %v116_v19  ;;  %vm158_vm1 = vmor %vm156_vm11, %vm157_vm12  ;;  %v110_v57 = vcvt.s32.f32 %v58_v38 }
  0x69   :  { %v2445_v32 = vsel %vm158_vm1, %v2326_v3, %v155_v51  ;;  %v71_v3 = vadd.s32 184, %v2303_v27  ;;  %v120_v51 = vcvt.s32.f32 %v68_v28  ;;  %vm198_vm11 = vmor %vm196_vm4, %vm197_vm5  ;;  %vm236_vm1 = vweird.f32 %v2448_v34 }
  0x6a   :  { %1970 = vrsqrt.f32 %v2364_v26  ;;  %3748 = vst [vmem:[#allocation19_spill] sm:$0xff] %v2445_v32 }
  0x6b   :  { %1972 = vrsqrt.f32 %v2378_v36  ;;  %v123_v6 = vcvt.s32.f32 %v71_v3 }
  0x6c   :  { %1974 = vrsqrt.f32 %v2396_v52 }
  0x6d   :  { %1976 = vrsqrt.f32 %v2401_v58  ;;  %v2505_v3 = vadd.f32 1.0, %v123_v6 }
  0x6e   :  { %1978 = vrsqrt.f32 %v2420_v13 }
  0x6f   :  { %1980 = vrsqrt.f32 %v2442_v29 }
  0x70   :  { %1982 = vrsqrt.f32 %v2448_v34 }
  0x71   :  { %1984 = vrsqrt.f32 %v2469_v53 }
  0x85   :  { %v2309_v45 = vpop.f32.mrf.mxu0  ;;  %v612_v46 = vpop.f32.mrf.mxu1 }
  0x86   :  { %v2354_v21 = vmul.f32 %v612_v46, %v2346_v16  ;;  %v2385_v46 = vpop.eup %1968 }
  0x87   :  { %v2391_v49 = vpop.eup %1970  ;;  %v181_v0 = vmul.f32 %v2385_v46, %v2359_v24  ;;  %vm187_vm8 = vweird.f32 %v2385_v46 }
  0x88   :  { %3744 = vst [vmem:[#allocation15_spill] sm:$0xff] %v2354_v21  ;;  %v311_v63 = vmul.f32 %v2391_v49, %v2364_v26  ;;  %v2410_v1 = vpop.eup %1972  ;;  %vm2548_vm12 = vmor %vm186_vm7, %vm187_vm8 }
  0x89   :  { %v201_v23 = vmul.f32 %v2410_v1, %v2378_v36  ;;  %v182_v25 = vmul.f32 %v2385_v46, %v181_v0  ;;  %v2458_v40 = vpop.eup %1974  ;;  %vm207_vm10 = vweird.f32 %v2410_v1 }
  0x8a   :  { %v312_v54 = vmul.f32 %v2391_v49, %v311_v63  ;;  %3751 = vst [vmem:[#allocation22_spill] sm:$0xff] %v2458_v40  ;;  %v321_v63 = vmul.f32 %v2458_v40, %v2396_v52  ;;  %vm208_vm13 = vmor %vm206_vm9, %vm207_vm10 }
  0x8b   :  { %v202_v43 = vmul.f32 %v2410_v1, %v201_v23 }
  0x8c   :  { %v2461_v42 = vmul.f32 0.5, %v312_v54  ;;  %v322_v38 = vmul.f32 %v2458_v40, %v321_v63 }
  0x8d   :  { %v2316_v59 = vpop.f32.mrf.mxu0  ;;  %v615_v60 = vpop.f32.mrf.mxu1  ;;  %v203_v54 = vmul.f32 0.5, %v202_v43  ;;  %v122_v43 = vcvt.s32.f32 %v70_v7 }
  0x8e   :  { %v2340_v12 = vmul.f32 %v615_v60, %v2330_v5  ;;  %v174_v60 = vsub.f32 1.5, %v173_v44  ;;  %3752 = vst [vmem:[#allocation23_spill] sm:$0xff] %v2461_v42  ;;  %v2464_v44 = vmul.f32 0.5, %v182_v25  ;;  %v111_v25 = vcvt.s32.f32 %v59_v55 }
  0x8f   :  { %v204_v55 = vsub.f32 1.5, %v203_v54 }
  0x90   :  { %3742 = vst [vmem:[#allocation13_spill] sm:$0xff] %v2340_v12  ;;  %v175_v17 = vmul.f32 %v2348_v18, %v174_v60  ;;  %v2474_v60 = vadd.f32 1.0, %v109_v62  ;;  %v184_v61 = vsub.f32 1.5, %v2464_v44 }
  0x91   :  { %v205_v5 = vmul.f32 %v2410_v1, %v204_v55 }
  0x92   :  { %v2456_v39 = vsel %vm178_vm3, %v2348_v18, %v175_v17  ;;  %v121_v18 = vcvt.s32.f32 %v69_v33  ;;  %v2489_v17 = vadd.f32 1.0, %v120_v51  ;;  %1986 = vrsqrt.f32 %v2474_v60 }
  0x93   :  { %3750 = vst [vmem:[#allocation21_spill] sm:$0xff] %v2456_v39  ;;  %v2510_v51 = vadd.f32 1.0, %v124_v14  ;;  %v185_v16 = vmul.f32 %v2385_v46, %v184_v61  ;;  %v2562_v61 = vmul.f32 %v2309_v45, %v2445_v32  ;;  %vm246_vm8 = vweird.f32 %v2474_v60 }
  0x94   :  { %v2492_v23 = vadd.f32 1.0, %v121_v18  ;;  %v60_v18 = vadd.s32 96, %v2303_v27  ;;  %1988 = vrsqrt.f32 %v2489_v17 }
  0x95   :  { %v2334_v9 = vpop.f32.mrf.mxu0  ;;  %v618_v10 = vpop.f32.mrf.mxu1  ;;  %3757 = vst [vmem:[#allocation26_spill] sm:$0xff] %v2562_v61 }
  0x96   :  { %v2337_v11 = vmul.f32 %v618_v10, %v2328_v4  ;;  %v165_v10 = vmul.f32 %v2344_v15, %v164_v56  ;;  %v194_v56 = vsub.f32 1.5, %v193_v35  ;;  %v2498_v35 = vadd.f32 1.0, %v110_v57 }
  0x97   :  { %1990 = vrsqrt.f32 %v2492_v23  ;;  %v112_v4 = vcvt.s32.f32 %v60_v18 }
  0x98   :  { %3741 = vst [vmem:[#allocation12_spill] sm:$0xff] %v2337_v11  ;;  %753 = vmatpush.msrb.mxu1 %v2337_v11  ;;  %v2451_v37 = vsel %vm168_vm2, %v2344_v15, %v165_v10  ;;  %v2466_v15 = vpop.eup %1976  ;;  %v195_v28 = vmul.f32 %v2381_v41, %v194_v56  ;;  %v2515_v56 = vadd.f32 1.0, %v111_v25  ;;  %1992 = vrsqrt.f32 %v2498_v35 }
  0x99   :  { %3749 = vst [vmem:[#allocation20_spill] sm:$0xff] %v2451_v37  ;;  %v211_v8 = vmul.f32 %v2466_v15, %v2401_v58  ;;  %v2487_v10 = vpop.eup %1978  ;;  %1994 = vrsqrt.f32 %v2505_v3  ;;  %v2584_v18 = vadd.f32 1.0, %v112_v4  ;;  %v938_v4 = vsel %vm937_vm6, %v2562_v61, 0.0 }
  0x9a   :  { %754 = vmatpush.msrb.mxu1 %v2340_v12  ;;  %v2496_v33 = vpop.eup %1980  ;;  %v331_v50 = vmul.f32 %v2487_v10, %v2420_v13  ;;  %1996 = vrsqrt.f32 %v2510_v51  ;;  %v2569_v55 = vsel %vm198_vm11, %v2381_v41, %v195_v28  ;;  %v2586_v41 = vmul.f32 0.5, %v322_v38 }
  0x9b   :  { %v2503_v62 = vpop.eup %1982  ;;  %v212_v44 = vmul.f32 %v2466_v15, %v211_v8  ;;  %v221_v57 = vmul.f32 %v2496_v33, %v2442_v29  ;;  %v2532_v8 = vadd.f32 1.0, %v122_v43  ;;  %1998 = vrsqrt.f32 %v2515_v56  ;;  %3758 = vst [vmem:[#allocation27_spill] sm:$0xff] %v2569_v55 }
  0x9c   :  { %755 = vmatpush.msrb.mxu1 %v2354_v21  ;;  %v2520_v63 = vpop.eup %1984  ;;  %v231_v6 = vmul.f32 %v2503_v62, %v2448_v34  ;;  %v332_v14 = vmul.f32 %v2487_v10, %v331_v50  ;;  %v2589_v28 = vsel %vm208_vm13, %v2410_v1, %v205_v5  ;;  %vm217_vm15 = vweird.f32 %v2466_v15 }
  0x9d   :  { %v2368_v30 = vpop.f32.mrf.mxu0  ;;  %v2370_v31 = vpop.f32.mrf.mxu1  ;;  %v213_v54 = vmul.f32 0.5, %v212_v44  ;;  %v341_v22 = vmul.f32 %v2520_v63, %v2469_v53  ;;  %v222_v50 = vmul.f32 %v2496_v33, %v221_v57  ;;  %v2573_v57 = vmul.f32 %v2316_v59, %v2451_v37  ;;  %vm2655_vm4 = vmor %vm216_vm14, %vm217_vm15 }
  0x9e   :  { %3745 = vst [vmem:[#allocation16_spill] sm:$0xff] %v2370_v31  ;;  %v2539_v25 = vpop.eup %1986  ;;  %v232_v44 = vmul.f32 %v2503_v62, %v231_v6  ;;  %2000 = vrsqrt.f32 %v2532_v8  ;;  %v2578_v36 = vmul.f32 0.5, %v332_v14  ;;  %v2594_v59 = vsel %vm2548_vm12, %v2385_v46, %v185_v16 }
  0x9f   :  { %v2564_v24 = vpop.eup %1988  ;;  %3759 = vst [vmem:[#allocation28_spill] sm:$0xff] %v2573_v57  ;;  %v241_v45 = vmul.f32 %v2539_v25, %v2474_v60  ;;  %v214_v32 = vsub.f32 1.5, %v213_v54  ;;  %v342_v54 = vmul.f32 %v2520_v63, %v341_v22  ;;  %v223_v31 = vmul.f32 0.5, %v222_v50 }
  0xa0   :  { %v2575_v11 = vpop.eup %1990  ;;  %3760 = vst [vmem:[#allocation29_spill] sm:$0xff] %v2578_v36  ;;  %v351_v37 = vmul.f32 %v2564_v24, %v2489_v17  ;;  %v233_v1 = vmul.f32 0.5, %v232_v44  ;;  %2002 = vrsqrt.f32 %v2584_v18  ;;  %vm227_vm2 = vweird.f32 %v2496_v33 }
  0xa1   :  { %v2582_v6 = vpop.eup %1992  ;;  %3761 = vst [vmem:[#allocation30_spill] sm:$0xff] %v2594_v59  ;;  %v361_v5 = vmul.f32 %v2575_v11, %v2492_v23  ;;  %v242_v50 = vmul.f32 %v2539_v25, %v241_v45  ;;  %v215_v61 = vmul.f32 %v2466_v15, %v214_v32  ;;  %v224_v21 = vsub.f32 1.5, %v223_v31  ;;  %vm2673_vm5 = vmor %vm226_vm0, %vm227_vm2 }
  0xa2   :  { %v2596_v14 = vpop.eup %1994  ;;  %v251_v12 = vmul.f32 %v2582_v6, %v2498_v35  ;;  %v352_v45 = vmul.f32 %v2564_v24, %v351_v37  ;;  %v234_v42 = vsub.f32 1.5, %v233_v1  ;;  %vm237_vm3 = vweird.f32 %v2503_v62 }
  0xa3   :  { %v2603_v38 = vpop.eup %1996  ;;  %v381_v44 = vmul.f32 %v2596_v14, %v2505_v3  ;;  %vm238_vm7 = vmor %vm236_vm1, %vm237_vm3  ;;  %v2689_v29 = vsel %vm2655_vm4, %v2466_v15, %v215_v61  ;;  %vm247_vm9 = vweird.f32 %v2539_v25  ;;  %vm256_vm10 = vweird.f32 %v2498_v35 }
  0xa4   :  { %v2609_v16 = vpop.eup %1998  ;;  %v391_v32 = vmul.f32 %v2603_v38, %v2510_v51  ;;  %v2660_v1 = vmul.f32 0.5, %v352_v45  ;;  %v235_v58 = vmul.f32 %v2503_v62, %v234_v42  ;;  %vm257_vm11 = vweird.f32 %v2582_v6  ;;  %vm2732_vm2 = vmor %vm246_vm8, %vm247_vm9 }
  0xa5   :  { %v2387_v47 = vpop.f32.mrf.mxu0  ;;  %v2389_v48 = vpop.f32.mrf.mxu1  ;;  %v382_v37 = vmul.f32 %v2596_v14, %v381_v44  ;;  %vm386_vm12 = vweird.f32 %v2505_v3  ;;  %vm387_vm13 = vweird.f32 %v2596_v14  ;;  %vm356_vm14 = vweird.f32 %v2489_v17 }
  0xa6   :  { %3746 = vst [vmem:[#allocation17_spill] sm:$0xff] %v2389_v48  ;;  %v939_v48 = vsel %vm937_vm6, %v2573_v57, 0.0  ;;  %v2629_v22 = vpop.eup %2000  ;;  %v2634_v57 = vmul.f32 0.5, %v342_v54  ;;  %v252_v54 = vmul.f32 %v2582_v6, %v251_v12  ;;  %v354_v34 = vsub.f32 1.5, %v2660_v1 }
  0xa7   :  { %v371_v31 = vmul.f32 %v2629_v22, %v2532_v8  ;;  %v2665_v12 = vpop.eup %2002  ;;  %v940_v45 = vadd.f32 %v939_v48, %v938_v4  ;;  %v383_v42 = vmul.f32 0.5, %v382_v37  ;;  %vm357_vm15 = vweird.f32 %v2564_v24 }
  0xa8   :  { %v253_v4 = vmul.f32 0.5, %v252_v54  ;;  %v2710_v54 = vmul.f32 %v2387_v47, %v2569_v55  ;;  %vm396_vm0 = vweird.f32 %v2510_v51  ;;  %vm397_vm1 = vweird.f32 %v2603_v38 }
  0xa9   :  { %vm266_vm3 = vweird.f32 %v2515_v56  ;;  %vm267_vm4 = vweird.f32 %v2609_v16  ;;  %vm346_vm8 = vweird.f32 %v2469_v53  ;;  %vm347_vm9 = vweird.f32 %v2520_v63 }
  0xad   :  { %v2429_v19 = vpop.f32.mrf.mxu0  ;;  %v2431_v20 = vpop.f32.mrf.mxu1 }
  0xae   :  { %3747 = vst [vmem:[#allocation18_spill] sm:$0xff] %v2431_v20  ;;  %v2627_v20 = vmul.f32 %v2334_v9, %v2456_v39  ;;  %v243_v9 = vmul.f32 0.5, %v242_v50  ;;  %v2644_v39 = vmul.f32 %v2368_v30, %v2594_v59  ;;  %v392_v30 = vmul.f32 %v2603_v38, %v391_v32 }
  0xaf   :  { %v225_v50 = vmul.f32 %v2496_v33, %v224_v21  ;;  %v945_v32 = vsel %vm937_vm6, %v2710_v54, 0.0 }
  0xb0   :  { %3763 = vst [vmem:[#allocation32_spill] sm:$0xff] %v2627_v20  ;;  %v941_v44 = vsel %vm937_vm6, %v2627_v20, 0.0  ;;  %v943_v48 = vsel %vm937_vm6, %v2644_v39, 0.0  ;;  %v393_v20 = vmul.f32 0.5, %v392_v30  ;;  %v384_v30 = vsub.f32 1.5, %v383_v42 }
  0xb1   :  { %3764 = vst [vmem:[#allocation33_spill] sm:$0xff] %v2644_v39  ;;  %v942_v40 = vadd.f32 %v941_v44, %v940_v45  ;;  %v2703_v39 = vsel %vm238_vm7, %v2503_v62, %v235_v58  ;;  %vm2760_vm7 = vmor %vm386_vm12, %vm387_vm13  ;;  %vm377_vm12 = vweird.f32 %v2629_v22 }
  0xb2   :  { %v394_v62 = vsub.f32 1.5, %v393_v20  ;;  %v385_v45 = vmul.f32 %v2596_v14, %v384_v30  ;;  %vm268_vm13 = vmor %vm266_vm3, %vm267_vm4  ;;  %vm317_vm3 = vweird.f32 %v2391_v49 }
  0xb3   :  { %v944_v37 = vadd.f32 %v943_v48, %v942_v40 }
  0xb5   :  { %v2479_v0 = vpop.f32.mrf.mxu0  ;;  %v2481_v2 = vpop.f32.mrf.mxu1 }
  0xb6   :  { %3753 = vst [vmem:[#allocation24_spill] sm:$0xff] %v2481_v2  ;;  %v362_v2 = vmul.f32 %v2575_v11, %v361_v5  ;;  %v2700_v5 = vsel %vm2673_vm5, %v2496_v33, %v225_v50  ;;  %v254_v33 = vsub.f32 1.5, %v253_v4  ;;  %v2738_v58 = vmul.f32 %v2479_v0, %v2689_v29  ;;  %vm2749_vm5 = vmor %vm256_vm10, %vm257_vm11 }
  0xb7   :  { %vm2771_vm10 = vmor %vm396_vm0, %vm397_vm1  ;;  %vm376_vm11 = vweird.f32 %v2532_v8  ;;  %vm366_vm0 = vweird.f32 %v2492_v23  ;;  %vm367_vm1 = vweird.f32 %v2575_v11 }
  0xb8   :  { %v363_v59 = vmul.f32 0.5, %v362_v2  ;;  %v244_v2 = vsub.f32 1.5, %v243_v9  ;;  %v271_v9 = vmul.f32 %v2665_v12, %v2584_v18  ;;  %v255_v35 = vmul.f32 %v2582_v6, %v254_v33  ;;  %vm378_vm4 = vmor %vm376_vm11, %vm377_vm12 }
  0xb9   :  { %vm44_vm11 = vcmask 122880   ;;  %vm2858_vm12 = vmor %vm356_vm14, %vm357_vm15  ;;  %vm337_vm14 = vweird.f32 %v2487_v10 }
  0xba   :  { %v364_v15 = vsub.f32 1.5, %v363_v59  ;;  %v2714_v59 = vmul.f32 %v2429_v19, %v2589_v28  ;;  %v272_v40 = vmul.f32 %v2665_v12, %v271_v9  ;;  %vm348_vm15 = vmor %vm346_vm8, %vm347_vm9 }
  0xbc   :  { %v2722_v47 = vmul.f32 %v2575_v11, %v364_v15  ;;  %v947_v0 = vsel %vm937_vm6, %v2714_v59, 0.0 }
  0xbd   :  { %v2527_v27 = vpop.f32.mrf.mxu0  ;;  %v2529_v7 = vpop.f32.mrf.mxu1 }
  0xbe   :  { %3754 = vst [vmem:[#allocation25_spill] sm:$0xff] %v2529_v7  ;;  %v261_v7 = vmul.f32 %v2609_v16, %v2515_v56  ;;  %v2783_v15 = vmul.f32 %v2527_v27, %v2700_v5  ;;  %v2800_v27 = vsel %vm2760_vm7, %v2596_v14, %v385_v45  ;;  %v2815_v14 = vsel %vm2749_vm5, %v2582_v6, %v255_v35 }
  0xbf   :  { %3777 = vst [vmem:[#allocation34_spill] sm:$0xff] %v2815_v14  ;;  %vm276_vm5 = vweird.f32 %v2584_v18  ;;  %vm277_vm7 = vweird.f32 %v2665_v12  ;;  %v2159_v45 = vmov 0.0   ;;  %v3785_v18 = vsub.f32 1.5, %v2634_v57  ;;  %v3786_v57 = vld [vmem:[#allocation22_spill] sm:$0xff] }
  0xc0   :  { %45 = vst.msk [vmem:[#allocation2] sm:$0x1] %vm44_vm11, %v2159_v45 }
  0xc1   :  { %46 = vst [vmem:[#allocation3] sm:$0x1] %v2159_v45 }
  0xc5   :  { %v2611_v46 = vpop.f32.mrf.mxu0  ;;  %v2613_v43 = vpop.f32.mrf.mxu1 }
  0xc6   :  { %3762 = vst [vmem:[#allocation31_spill] sm:$0xff] %v2613_v43  ;;  %v262_v43 = vmul.f32 %v2609_v16, %v261_v7  ;;  %v372_v7 = vmul.f32 %v2629_v22, %v371_v31  ;;  %v245_v31 = vmul.f32 %v2539_v25, %v244_v2  ;;  %v395_v2 = vmul.f32 %v2603_v38, %v394_v62 }
  0xc7   :  { %v2793_v51 = vmul.f32 %v2611_v46, %v2703_v39 }
  0xc8   :  { %v263_v61 = vmul.f32 0.5, %v262_v43  ;;  %v373_v44 = vmul.f32 0.5, %v372_v7  ;;  %v273_v7 = vmul.f32 0.5, %v272_v40  ;;  %v2779_v9 = vsel %vm2732_vm2, %v2539_v25, %v245_v31 }
  0xc9   :  { %v949_v25 = vsel %vm937_vm6, %v2738_v58, 0.0  ;;  %vm316_vm2 = vweird.f32 %v2364_v26  ;;  %v2809_v46 = vsel %vm2771_vm10, %v2603_v38, %v395_v2  ;;  %v951_v38 = vsel %vm937_vm6, %v2783_v15, 0.0  ;;  %vm2842_vm10 = vmor %vm366_vm0, %vm367_vm1 }
  0xca   :  { %v264_v19 = vsub.f32 1.5, %v263_v61  ;;  %v374_v42 = vsub.f32 1.5, %v373_v44  ;;  %v946_v61 = vadd.f32 %v945_v32, %v944_v37  ;;  %v274_v31 = vsub.f32 1.5, %v273_v7  ;;  %vm318_vm9 = vmor %vm316_vm2, %vm317_vm3 }
  0xcb   :  { %v953_v8 = vsel %vm937_vm6, %v2793_v51, 0.0  ;;  %v355_v32 = vmul.f32 %v2564_v24, %v354_v34  ;;  %vm336_vm0 = vweird.f32 %v2420_v13  ;;  %v324_v34 = vsub.f32 1.5, %v2586_v41 }
  0xcc   :  { %v265_v3 = vmul.f32 %v2609_v16, %v264_v19  ;;  %v948_v56 = vadd.f32 %v947_v0, %v946_v61  ;;  %v375_v37 = vmul.f32 %v2629_v22, %v374_v42  ;;  %v275_v50 = vmul.f32 %v2665_v12, %v274_v31  ;;  %vm338_vm8 = vmor %vm336_vm0, %vm337_vm14 }
  0xcd   :  { %v2677_v21 = vpop.f32.mrf.mxu0  ;;  %v2679_v36 = vpop.f32.mrf.mxu1  ;;  %v2879_v60 = vsel %vm2842_vm10, %v2575_v11, %v2722_v47  ;;  %v345_v0 = vmul.f32 %v2520_v63, %v3785_v18  ;;  %vm326_vm1 = vweird.f32 %v2396_v52  ;;  %v3788_v47 = vld [vmem:[#allocation29_spill] sm:$0xff]  ;;  %v3790_v35 = vld [vmem:[#allocation31_spill] sm:$0xff]  ;;  %v325_v61 = vmul.f32 %v3786_v57, %v324_v34 }
  0xce   :  { %v2820_v30 = vsel %vm268_vm13, %v2609_v16, %v265_v3  ;;  %v2824_v44 = vmul.f32 %v2677_v21, %v2779_v9  ;;  %v950_v33 = vadd.f32 %v949_v25, %v948_v56  ;;  %vm2866_vm13 = vmor %vm276_vm5, %vm277_vm7  ;;  %v3789_v42 = vsub.f32 1.5, %v3788_v47  ;;  %v3791_v25 = vld [vmem:[#allocation23_spill] sm:$0xff]  ;;  %v3798_v34 = vld [vmem:[#allocation17_spill] sm:$0xff] }
  0xcf   :  { %3778 = vst [vmem:[#allocation35_spill] sm:$0xff] %v2820_v30  ;;  %v2900_v41 = vsel %vm2866_vm13, %v2665_v12, %v275_v50  ;;  %v669_v4 = vmul.f32 %v3790_v35, %v2879_v60  ;;  %v3792_v56 = vsub.f32 1.5, %v3791_v25  ;;  %v3795_v52 = vld [vmem:[#allocation15_spill] sm:$0xff]  ;;  %vm677_vm2 = vcmask 588800  }
  0xd0   :  { %v955_v17 = vsel %vm937_vm6, %v2824_v44, 0.0  ;;  %3787 = vst [vmem:[#allocation22_spill] sm:$0xff] %v2900_v41  ;;  %v335_v53 = vmul.f32 %v2487_v10, %v3789_v42  ;;  %v963_v23 = vsel %vm937_vm6, %v3795_v52, 0.0 }
  0xd1   :  { %v979_v25 = vsel %vm937_vm6, %v669_v4, 0.0 }
  0xd5   :  { %v603_v43 = vpop.f32.mrf.mxu0  ;;  %v642_v20 = vpop.f32.mrf.mxu1 }
  0xd6   :  { %v2829_v19 = vmul.f32 %v642_v20, %v2800_v27  ;;  %v658_v21 = vmul.f32 %v603_v43, %v2815_v14  ;;  %v2848_v20 = vsel %vm378_vm4, %v2629_v22, %v375_v37  ;;  %v952_v43 = vadd.f32 %v951_v38, %v950_v33  ;;  %v3793_v38 = vld [vmem:[#allocation25_spill] sm:$0xff] }
  0xd7   :  { %v2888_v48 = vmul.f32 %v2679_v36, %v2848_v20  ;;  %vm327_vm4 = vweird.f32 %v3786_v57  ;;  %v2905_v36 = vsel %vm2858_vm12, %v2564_v24, %v355_v32  ;;  %v2919_v24 = vsel %vm348_vm15, %v2520_v63, %v345_v0  ;;  %v3797_v22 = vld [vmem:[#allocation13_spill] sm:$0xff] }
  0xd8   :  { %v954_v2 = vadd.f32 %v953_v8, %v952_v43  ;;  %v957_v11 = vsel %vm937_vm6, %v658_v21, 0.0  ;;  %v315_v37 = vmul.f32 %v2391_v49, %v3792_v56  ;;  %v668_v33 = vmul.f32 %v3793_v38, %v2905_v36  ;;  %vm328_vm5 = vmor %vm326_vm1, %vm327_vm4  ;;  %v3801_v56 = vld [vmem:[#allocation33_spill] sm:$0xff]  ;;  %v3803_v38 = vld [vmem:[#allocation28_spill] sm:$0xff] }
  0xd9   :  { %v2937_v63 = vsel %vm338_vm8, %v2487_v10, %v335_v53  ;;  %v2943_v16 = vsel %vm328_vm5, %v3786_v57, %v325_v61  ;;  %v3796_v10 = vld [vmem:[#allocation18_spill] sm:$0xff]  ;;  %v2961_v57 = vld [vmem:[#allocation4 + $0x8] sm:$0xff] }
  0xda   :  { %v956_v7 = vadd.f32 %v955_v17, %v954_v2  ;;  %v2946_v50 = vsel %vm318_vm9, %v2391_v49, %v315_v37  ;;  %v666_v45 = vmul.f32 %v3796_v10, %v2937_v63  ;;  %v965_v17 = vsel %vm937_vm6, %v3797_v22, 0.0  ;;  %v3799_v49 = vld [vmem:[#allocation16_spill] sm:$0xff]  ;;  %v673_v10 = vld [vmem:[#allocation2] sm:$0x1]  ;;  %v3006_v22 = vld [vmem:[#allocation4 + $0x20] sm:$0xff] }
  0xdb   :  { %v665_v18 = vmul.f32 %v3798_v34, %v2943_v16  ;;  %v664_v0 = vmul.f32 %v3799_v49, %v2946_v50  ;;  %v977_v61 = vsel %vm937_vm6, %v668_v33, 0.0  ;;  %v981_v37 = vsel %vm937_vm6, %v2888_v48, 0.0  ;;  %v3016_v49 = vld [vmem:[#allocation4 + $0x58] sm:$0xff] }
  0xdc   :  { %v958_v31 = vadd.f32 %v957_v11, %v956_v7  ;;  %v3800_v11 = vld [vmem:[#allocation12_spill] sm:$0xff]  ;;  %3807 = vst [vmem:[#allocation23_spill] sm:$0xff] %v3016_v49 }
  0xdd   :  { %v606_v62 = vpop.f32.mrf.mxu0  ;;  %v645_v40 = vpop.f32.mrf.mxu1  ;;  %v971_v53 = vsel %vm937_vm6, %v665_v18, 0.0 }
  0xde   :  { %v2836_v6 = vmul.f32 %v645_v40, %v2809_v46  ;;  %v659_v1 = vmul.f32 %v606_v62, %v2820_v30  ;;  %v3794_v40 = vld [vmem:[#allocation24_spill] sm:$0xff] }
  0xdf   :  { %v667_v8 = vmul.f32 %v3794_v40, %v2919_v24 }
  0xe0   :  { %852 = vmatpush.msra.mxu2 %v2836_v6  ;;  %v959_v3 = vsel %vm937_vm6, %v659_v1, 0.0 }
  0xe1   :  { %v960_v62 = vadd.f32 %v959_v3, %v958_v31  ;;  %v975_v3 = vsel %vm937_vm6, %v667_v8, 0.0 }
  0xe2   :  { %853 = vmatpush.msra.mxu2 %v2829_v19 }
  0xe4   :  { %854 = vmatpush.msra.mxu2 %v2888_v48 }
  0xe5   :  { %v609_v12 = vpop.f32.mrf.mxu0 }
  0xe6   :  { %855 = vmatpush.msra.mxu2 %v669_v4  ;;  %v660_v13 = vmul.f32 %v609_v12, %v2900_v41  ;;  %v985_v4 = vsel %vm937_vm6, %v2836_v6, 0.0 }
  0xe8   :  { %756 = vmatpush.msrb.mxu1 %v660_v13  ;;  %v961_v26 = vsel %vm937_vm6, %v660_v13, 0.0  ;;  %856 = vmatpush.msra.mxu2 %v668_v33  ;;  %v983_v13 = vsel %vm937_vm6, %v2829_v19, 0.0  ;;  %v2989_v33 = vld [vmem:[#allocation4 + $0x28] sm:$0xff] }
  0xe9   :  { %v962_v32 = vadd.f32 %v961_v26, %v960_v62  ;;  %v3804_v26 = vld [vmem:[#allocation26_spill] sm:$0xff] }
  0xea   :  { %757 = vmatpush.msrb.mxu1 %v659_v1  ;;  %857 = vmatpush.msra.mxu2 %v667_v8  ;;  %v967_v1 = vsel %vm937_vm6, %v3800_v11, 0.0  ;;  %v2997_v8 = vld [vmem:[#allocation4 + $0x10] sm:$0xff] }
  0xeb   :  { %v964_v43 = vadd.f32 %v963_v23, %v962_v32  ;;  %v2999_v32 = vld [vmem:[#allocation4 + $0x38] sm:$0xff]  ;;  %v3028_v11 = vld [vmem:[#allocation4 + $0x50] sm:$0xff] }
  0xec   :  { %758 = vmatpush.msrb.mxu1 %v658_v21  ;;  %858 = vmatpush.msra.mxu2 %v666_v45  ;;  %v969_v21 = vsel %vm937_vm6, %v664_v0, 0.0  ;;  %3805 = vst [vmem:[#allocation29_spill] sm:$0xff] %v2999_v32 }
  0xed   :  { %v966_v2 = vadd.f32 %v965_v17, %v964_v43  ;;  %v3004_v43 = vld [vmem:[#allocation2] ss:$0 sm:$0xff]  ;;  %v3008_v17 = vld [vmem:[#allocation4 + $0x48] sm:$0xff] }
  0xee   :  { %759 = vmatpush.msrb.mxu1 %v2824_v44  ;;  %859 = vmatpush.msra.mxu2 %v665_v18  ;;  %v973_v44 = vsel %vm937_vm6, %v666_v45, 0.0  ;;  %3806 = vst [vmem:[#allocation31_spill] sm:$0xff] %v3008_v17  ;;  %v3014_v18 = vld [vmem:[#allocation4 + $0x30] sm:$0xff] }
  0xef   :  { %v968_v47 = vadd.f32 %v967_v1, %v966_v2  ;;  %v3023_v2 = vld [vmem:[#allocation4 + $0x68] sm:$0xff]  ;;  %v3030_v1 = vld [vmem:[#allocation4 + $0x78] sm:$0xff] }
  0xf0   :  { %760 = vmatpush.msrb.mxu1 %v2793_v51  ;;  %860 = vmatpush.msra.mxu2 %v664_v0  ;;  %v2973_v51 = vld [vmem:[#allocation4 + $0x18] sm:$0xff]  ;;  %v3021_v0 = vld [vmem:[#allocation4 + $0x40] sm:$0xff]  ;;  %3808 = vst [vmem:[#allocation25_spill] sm:$0xff] %v3023_v2 }
  0xf1   :  { %1863 = vmatmul.msk.f32.vlgmr.msra.gmra.mxu2 %vm677_vm2, %v2961_v57  ;;  %v970_v42 = vadd.f32 %v969_v21, %v968_v47  ;;  %3809 = vst [vmem:[#allocation24_spill] sm:$0xff] %v3030_v1  ;;  %v3035_v47 = vld [vmem:[#allocation4 + $0x60] sm:$0xff]  ;;  %v3037_v21 = vld [vmem:[#allocation4 + $0x88] sm:$0xff] }
  0xf2   :  { %761 = vmatpush.msrb.mxu1 %v2783_v15  ;;  %3810 = vst [vmem:[#allocation15_spill] sm:$0xff] %v3037_v21 }
  0xf3   :  { %v972_v7 = vadd.f32 %v971_v53, %v970_v42  ;;  %v3042_v42 = vld [vmem:[#allocation4 + $0x70] sm:$0xff]  ;;  %v3044_v53 = vld [vmem:[#allocation4 + $0x98] sm:$0xff] }
  0xf4   :  { %762 = vmatpush.msrb.mxu1 %v2738_v58  ;;  %3811 = vst [vmem:[#allocation18_spill] sm:$0xff] %v3044_v53 }
  0xf5   :  { %v974_v35 = vadd.f32 %v973_v44, %v972_v7  ;;  %v3049_v7 = vld [vmem:[#allocation4 + $0x80] sm:$0xff]  ;;  %v3051_v44 = vld [vmem:[#allocation4 + $0xa8] sm:$0xff] }
  0xf6   :  { %763 = vmatpush.msrb.mxu1 %v2714_v59  ;;  %v3802_v59 = vld [vmem:[#allocation32_spill] sm:$0xff]  ;;  %3812 = vst [vmem:[#allocation13_spill] sm:$0xff] %v3051_v44 }
  0xf7   :  { %v976_v12 = vadd.f32 %v975_v3, %v974_v35  ;;  %v3056_v35 = vld [vmem:[#allocation4 + $0x90] sm:$0xff]  ;;  %v3058_v3 = vld [vmem:[#allocation4 + $0xb8] sm:$0xff] }
  0xf8   :  { %764 = vmatpush.msrb.mxu1 %v2710_v54  ;;  %v2987_v54 = vld [vmem:[#allocation4] sm:$0xff]  ;;  %3813 = vst [vmem:[#allocation17_spill] sm:$0xff] %v3058_v3 }
  0xf9   :  { %1864 = vmatmul.msk.f32.gmra.mxu2 %vm677_vm2, %v2973_v51  ;;  %v978_v15 = vadd.f32 %v977_v61, %v976_v12  ;;  %v3063_v12 = vld [vmem:[#allocation4 + $0xa0] sm:$0xff]  ;;  %v3065_v61 = vld [vmem:[#allocation4 + $0xc8] sm:$0xff] }
  0xfa   :  { %765 = vmatpush.msrb.mxu1 %v3801_v56  ;;  %3814 = vst [vmem:[#allocation16_spill] sm:$0xff] %v3065_v61  ;;  %v3077_v56 = vld [vmem:[#allocation4 + $0xc0] sm:$0xff] }
  0xfb   :  { %v980_v58 = vadd.f32 %v979_v25, %v978_v15  ;;  %v3070_v15 = vld [vmem:[#allocation4 + $0xb0] sm:$0xff]  ;;  %v3072_v25 = vld [vmem:[#allocation4 + $0xd8] sm:$0xff]  ;;  %3817 = vst [vmem:[#allocation32_spill] sm:$0xff] %v3077_v56 }
  0xfc   :  { %766 = vmatpush.msrb.mxu1 %v3802_v59  ;;  %3815 = vst [vmem:[#allocation12_spill] sm:$0xff] %v3070_v15  ;;  %v3086_v59 = vld [vmem:[#allocation4 + $0xf8] sm:$0xff] }
  0xfd   :  { %v982_v31 = vadd.f32 %v981_v37, %v980_v58  ;;  %3816 = vst [vmem:[#allocation33_spill] sm:$0xff] %v3072_v25  ;;  %v3079_v58 = vld [vmem:[#allocation4 + $0xe8] sm:$0xff]  ;;  %v3084_v37 = vld [vmem:[#allocation4 + $0xd0] sm:$0xff] }
  0xfe   :  { %767 = vmatpush.msrb.mxu1 %v3803_v38  ;;  %3818 = vst [vmem:[#allocation28_spill] sm:$0xff] %v3079_v58  ;;  %v1076_v38 = vld [vmem:[%s3669_s4 + $0x8] sm:$0xff] }
  0xff   :  { %v984_v62 = vadd.f32 %v983_v13, %v982_v31  ;;  %3819 = vst [vmem:[#allocation26_spill] sm:$0xff] %v3084_v37  ;;  %v3091_v31 = vld [vmem:[#allocation4 + $0xe0] sm:$0xff]  ;;  %v3093_v13 = vld [vmem:[#allocation4 + $0x108] sm:$0xff]  ;;  %1939 = vmatpush.msrb.mxu2 %v1076_v38  ;;  %1940 = vmatpush.msra.mxu3 %v1076_v38 }
 0x100   :  { %768 = vmatpush.msrb.mxu1 %v3804_v26  ;;  %3820 = vst [vmem:[#allocation36_spill] sm:$0xff] %v3086_v59  ;;  %v3103_v26 = vld [vmem:[#allocation4 + $0x118] sm:$0xff] }
 0x101   :  { %v986_v40 = vadd.f32 %v985_v4, %v984_v62  ;;  %769 = vmatmul.f32.vlgmr.msrb.gmra.mxu1 %v2987_v54  ;;  %1865 = vmatmul.msk.f32.gmra.mxu2 %vm677_vm2, %v2989_v33  ;;  %3821 = vst [vmem:[#allocation37_spill] sm:$0xff] %v3091_v31  ;;  %v3101_v4 = vld [vmem:[#allocation4 + $0xf0] sm:$0xff] }
 0x102   :  { %3822 = vst [vmem:[#allocation38_spill] sm:$0xff] %v3093_v13  ;;  %1166 = vmatpush.msra.mxu1 %v1076_v38  ;;  %v3120_v38 = vld [vmem:[#allocation4 + $0x138] sm:$0xff] }
 0x103   :  { %v987_v48 = vrot.slane %v986_v40, 4  ;;  %3823 = vst [vmem:[#allocation39_spill] sm:$0xff] %v3101_v4 }
 0x104   :  { %3824 = vst [vmem:[#allocation40_spill] sm:$0xff] %v3103_v26 }
 0x105   :  { %v988_v19 = vadd.f32 %v987_v48, %v986_v40  ;;  %3828 = vst [vmem:[#allocation44_spill] sm:$0xff] %v3120_v38 }
 0x107   :  { %v989_v52 = vrot.slane %v988_v19, 2 }
 0x109   :  { %v990_v23 = vadd.f32 %v989_v52, %v988_v19  ;;  %772 = vmatmul.f32.gmra.mxu1 %v2997_v8  ;;  %1866 = vmatmul.msk.f32.gmra.mxu2 %vm677_vm2, %v2999_v32  ;;  %v3108_v19 = vld [vmem:[#allocation4 + $0x100] sm:$0xff]  ;;  %v3110_v52 = vld [vmem:[#allocation4 + $0x128] sm:$0xff] }
 0x10a   :  { %3825 = vst [vmem:[#allocation41_spill] sm:$0xff] %v3108_v19 }
 0x10b   :  { %v991_v6 = vrot.slane %v990_v23, 1  ;;  %3826 = vst [vmem:[#allocation42_spill] sm:$0xff] %v3110_v52 }
 0x10d   :  { %v992_v45 = vadd.f32 %v991_v6, %v990_v23 }
 0x10f   :  { %v993_v34 = vadd.f32 %v992_v45, %v673_v10 }
 0x111   :  { %995 = vst.msk [vmem:[#allocation2] sm:$0x1] %vm44_vm11, %v993_v34  ;;  %775 = vmatmul.f32.gmra.mxu1 %v3006_v22  ;;  %1867 = vmatmul.msk.f32.gmra.mxu2 %vm677_vm2, %v3008_v17  ;;  %v3118_v34 = vld [vmem:[#allocation4 + $0x110] sm:$0xff] }
 0x112   :  { %3827 = vst [vmem:[#allocation43_spill] sm:$0xff] %v3118_v34 }
 0x119   :  { %778 = vmatmul.f32.gmra.mxu1 %v3014_v18  ;;  %1868 = vmatmul.msk.f32.gmra.mxu2 %vm677_vm2, %v3016_v49 }
 0x121   :  { %781 = vmatmul.f32.gmra.mxu1 %v3021_v0  ;;  %1869 = vmatmul.msk.f32.gmra.mxu2 %vm677_vm2, %v3023_v2  ;;  %v3841_v2 = vld [vmem:[#allocation21_spill] sm:$0xff] }
 0x129   :  { %784 = vmatmul.f32.gmra.mxu1 %v3028_v11  ;;  %1870 = vmatmul.msk.f32.gmra.mxu2 %vm677_vm2, %v3030_v1 }
 0x131   :  { %787 = vmatmul.f32.gmra.mxu1 %v3035_v47  ;;  %1871 = vmatmul.msk.f32.gmra.mxu2 %vm677_vm2, %v3037_v21  ;;  %v3157_v21 = vld [vmem:[#allocation4 + $0x160] sm:$0xff] }
 0x132   :  { %3837 = vst [vmem:[#allocation53_spill] sm:$0xff] %v3157_v21 }
 0x139   :  { %790 = vmatmul.f32.gmra.mxu1 %v3042_v42  ;;  %1872 = vmatmul.msk.f32.gmra.mxu2 %vm677_vm2, %v3044_v53 }
 0x141   :  { %793 = vmatmul.f32.gmra.mxu1 %v3049_v7  ;;  %1873 = vmatmul.msk.f32.gmra.mxu2 %vm677_vm2, %v3051_v44  ;;  %v3151_v44 = vld [vmem:[#allocation4 + $0x178] sm:$0xff] }
 0x142   :  { %3836 = vst [vmem:[#allocation52_spill] sm:$0xff] %v3151_v44 }
 0x149   :  { %796 = vmatmul.f32.gmra.mxu1 %v3056_v35  ;;  %1874 = vmatmul.msk.f32.gmra.mxu2 %vm677_vm2, %v3058_v3  ;;  %v3141_v3 = vld [vmem:[#allocation4 + $0x168] sm:$0xff] }
 0x14a   :  { %3834 = vst [vmem:[#allocation50_spill] sm:$0xff] %v3141_v3 }
 0x151   :  { %799 = vmatmul.f32.gmra.mxu1 %v3063_v12  ;;  %1875 = vmatmul.msk.f32.gmra.mxu2 %vm677_vm2, %v3065_v61  ;;  %v3139_v61 = vld [vmem:[#allocation4 + $0x140] sm:$0xff] }
 0x152   :  { %3833 = vst [vmem:[#allocation49_spill] sm:$0xff] %v3139_v61 }
 0x159   :  { %802 = vmatmul.f32.gmra.mxu1 %v3070_v15  ;;  %1876 = vmatmul.msk.f32.gmra.mxu2 %vm677_vm2, %v3072_v25 }
 0x161   :  { %805 = vmatmul.f32.gmra.mxu1 %v3077_v56  ;;  %1877 = vmatmul.msk.f32.gmra.mxu2 %vm677_vm2, %v3079_v58  ;;  %v3134_v58 = vld [vmem:[#allocation4 + $0x158] sm:$0xff] }
 0x162   :  { %3832 = vst [vmem:[#allocation48_spill] sm:$0xff] %v3134_v58 }
 0x169   :  { %808 = vmatmul.f32.gmra.mxu1 %v3084_v37  ;;  %1878 = vmatmul.msk.f32.gmra.mxu2 %vm677_vm2, %v3086_v59  ;;  %v3132_v59 = vld [vmem:[#allocation4 + $0x130] sm:$0xff] }
 0x16a   :  { %3831 = vst [vmem:[#allocation47_spill] sm:$0xff] %v3132_v59 }
 0x171   :  { %811 = vmatmul.f32.gmra.mxu1 %v3091_v31  ;;  %1879 = vmatmul.msk.f32.gmra.mxu2 %vm677_vm2, %v3093_v13  ;;  %v3172_v31 = vld [vmem:[#allocation4 + $0x170] sm:$0xff] }
 0x174   :  { %v862_v62 = vpop.f32.mrf.mxu2 }
 0x179   :  { %814 = vmatmul.f32.gmra.mxu1 %v3101_v4  ;;  %1880 = vmatmul.msk.f32.gmra.mxu2 %vm677_vm2, %v3103_v26 }
 0x17c   :  { %v865_v40 = vpop.f32.mrf.mxu2 }
 0x17e   :  { %v770_v48 = vpop.f32.mrf.mxu1 }
 0x17f   :  { %v771_v23 = vadd.f32 %v3004_v43, %v770_v48 }
 0x181   :  { %v3113_v6 = vadd.f32 %v862_v62, %v771_v23  ;;  %817 = vmatmul.f32.gmra.mxu1 %v3108_v19  ;;  %1881 = vmatmul.msk.f32.gmra.mxu2 %vm677_vm2, %v3110_v52  ;;  %v3125_v62 = vld [vmem:[#allocation4 + $0x120] sm:$0xff]  ;;  %v3127_v23 = vld [vmem:[#allocation4 + $0x148] sm:$0xff] }
 0x182   :  { %3829 = vst [vmem:[#allocation45_spill] sm:$0xff] %v3125_v62 }
 0x183   :  { %3830 = vst [vmem:[#allocation46_spill] sm:$0xff] %v3127_v23 }
 0x184   :  { %v868_v10 = vpop.f32.mrf.mxu2 }
 0x186   :  { %v773_v45 = vpop.f32.mrf.mxu1 }
 0x189   :  { %820 = vmatmul.f32.gmra.mxu1 %v3118_v34  ;;  %1882 = vmatmul.msk.f32.gmra.mxu2 %vm677_vm2, %v3120_v38  ;;  %v774_v34 = vadd.f32 %v3004_v43, %v773_v45  ;;  %v3166_v45 = vld [vmem:[%s3668_s3] ss:$0 sm:$0xff] }
 0x18b   :  { %v866_v53 = vadd.f32 %v865_v40, %v774_v34 }
 0x18c   :  { %v871_v26 = vpop.f32.mrf.mxu2 }
 0x18e   :  { %v776_v48 = vpop.f32.mrf.mxu1 }
 0x18f   :  { %v777_v1 = vadd.f32 %v3004_v43, %v776_v48 }
 0x191   :  { %823 = vmatmul.f32.gmra.mxu1 %v3125_v62  ;;  %1883 = vmatmul.msk.f32.gmra.mxu2 %vm677_vm2, %v3127_v23  ;;  %v1075_v23 = vld [vmem:[%s3669_s4] sm:$0xff]  ;;  %v3149_v62 = vld [vmem:[#allocation4 + $0x150] sm:$0xff]  ;;  %v869_v34 = vadd.f32 %v868_v10, %v777_v1 }
 0x192   :  { %1941 = vmatpush.msrb.mxu2 %v1075_v23  ;;  %1167 = vmatpush.msra.mxu1 %v1075_v23  ;;  %3835 = vst [vmem:[#allocation51_spill] sm:$0xff] %v3149_v62  ;;  %v3842_v1 = vld [vmem:[#allocation19_spill] sm:$0xff] }
 0x193   :  { %1942 = vmatpush.msra.mxu3 %v1075_v23  ;;  %v3839_v23 = vld [vmem:[#allocation20_spill] sm:$0xff]  ;;  %v998_v48 = vmul.f32 %v869_v34, %v3841_v2  ;;  %v996_v10 = vmul.f32 %v3113_v6, %v3842_v1 }
 0x194   :  { %v874_v52 = vpop.f32.mrf.mxu2  ;;  %v997_v4 = vmul.f32 %v866_v53, %v3839_v23  ;;  %3840 = vst [vmem:[#allocation20_spill] sm:$0xff] %v3172_v31 }
 0x196   :  { %v779_v13 = vpop.f32.mrf.mxu1  ;;  %v1026_v40 = vadd.f32 %v3166_v45, %v997_v4  ;;  %v3179_v4 = vld [vmem:[#allocation4 + $0x180] sm:$0xff] }
 0x197   :  { %v780_v37 = vadd.f32 %v3004_v43, %v779_v13  ;;  %v1025_v13 = vadd.f32 %v3166_v45, %v996_v10 }
 0x198   :  { %v1051_v53 = vmax.f32 %v1026_v40, 0.0  ;;  %v3843_v40 = vld [vmem:[#allocation30_spill] sm:$0xff] }
 0x199   :  { %826 = vmatmul.f32.gmra.mxu1 %v3132_v59  ;;  %1884 = vmatmul.msk.f32.gmra.mxu2 %vm677_vm2, %v3134_v58  ;;  %v872_v49 = vadd.f32 %v871_v26, %v780_v37 }
 0x19b   :  { %v999_v15 = vmul.f32 %v872_v49, %v3843_v40 }
 0x19c   :  { %v877_v38 = vpop.f32.mrf.mxu2 }
 0x19d   :  { %v1028_v37 = vadd.f32 %v3166_v45, %v999_v15 }
 0x19e   :  { %v782_v25 = vpop.f32.mrf.mxu1 }
 0x19f   :  { %v783_v34 = vadd.f32 %v3004_v43, %v782_v25  ;;  %v1053_v32 = vmax.f32 %v1028_v37, 0.0 }
 0x1a1   :  { %829 = vmatmul.f32.gmra.mxu1 %v3139_v61  ;;  %1885 = vmatmul.msk.f32.gmra.mxu2 %vm677_vm2, %v3141_v3  ;;  %v3159_v3 = vld [vmem:[#allocation4 + $0x188] sm:$0xff]  ;;  %v875_v26 = vadd.f32 %v874_v52, %v783_v34 }
 0x1a2   :  { %3838 = vst [vmem:[#allocation54_spill] sm:$0xff] %v3159_v3 }
 0x1a4   :  { %v880_v59 = vpop.f32.mrf.mxu2 }
 0x1a6   :  { %v785_v58 = vpop.f32.mrf.mxu1 }
 0x1a7   :  { %v786_v49 = vadd.f32 %v3004_v43, %v785_v58 }
 0x1a9   :  { %832 = vmatmul.f32.gmra.mxu1 %v3149_v62  ;;  %1886 = vmatmul.msk.f32.gmra.mxu2 %vm677_vm2, %v3151_v44  ;;  %v878_v25 = vadd.f32 %v877_v38, %v786_v49 }
 0x1ab   :  { %v1001_v10 = vmul.f32 %v878_v25, %v2589_v28 }
 0x1ac   :  { %v883_v19 = vpop.f32.mrf.mxu2 }
 0x1ae   :  { %v788_v61 = vpop.f32.mrf.mxu1 }
 0x1af   :  { %v789_v34 = vadd.f32 %v3004_v43, %v788_v61 }
 0x1b1   :  { %835 = vmatmul.f32.gmra.mxu1 %v3157_v21  ;;  %1887 = vmatmul.msk.f32.gmra.mxu2 %vm677_vm2, %v3159_v3  ;;  %v1027_v21 = vadd.f32 %v3166_v45, %v998_v48  ;;  %v881_v58 = vadd.f32 %v880_v59, %v789_v34 }
 0x1b3   :  { %v1052_v17 = vmax.f32 %v1027_v21, 0.0  ;;  %v1000_v21 = vmul.f32 %v875_v26, %v2569_v55 }
 0x1b4   :  { %v886_v44 = vpop.f32.mrf.mxu2 }
 0x1b6   :  { %v791_v62 = vpop.f32.mrf.mxu1 }
 0x1b7   :  { %v792_v38 = vadd.f32 %v3004_v43, %v791_v62 }
 0x1b9   :  { %838 = vmatmul.f32.gmra.mxu1 %v3172_v31  ;;  %1889 = vmatmul.msk.f32.vlgmr.msrb.gmra.mxu2 %vm937_vm6, %v1051_v53  ;;  %v1050_v31 = vmax.f32 %v1025_v13, 0.0  ;;  %v1030_v13 = vadd.f32 %v3166_v45, %v1001_v10  ;;  %v884_v49 = vadd.f32 %v883_v19, %v792_v38 }
 0x1bb   :  { %v1055_v26 = vmax.f32 %v1030_v13, 0.0 }
 0x1bc   :  { %v889_v3 = vpop.f32.mrf.mxu2 }
 0x1be   :  { %v794_v56 = vpop.f32.mrf.mxu1 }
 0x1bf   :  { %v795_v10 = vadd.f32 %v3004_v43, %v794_v56 }
 0x1c1   :  { %841 = vmatmul.f32.gmra.mxu1 %v3179_v4  ;;  %1890 = vmatmul.msk.f32.gmra.mxu2 %vm937_vm6, %v1052_v17  ;;  %v1029_v17 = vadd.f32 %v3166_v45, %v1000_v21  ;;  %v887_v62 = vadd.f32 %v886_v44, %v795_v10 }
 0x1c3   :  { %v1054_v52 = vmax.f32 %v1029_v17, 0.0 }
 0x1c4   :  { %v3189_v53 = vpop.f32.mrf.mxu2 }
 0x1c6   :  { %v797_v48 = vpop.f32.mrf.mxu1 }
 0x1c9   :  { %1888 = vmatmul.msk.f32.vlgmr.msra.gmra.mxu1 %vm937_vm6, %v1050_v31  ;;  %1891 = vmatmul.msk.f32.gmra.mxu2 %vm937_vm6, %v1053_v32  ;;  %v1002_v32 = vmul.f32 %v881_v58, %v2689_v29 }
 0x1cb   :  { %v1031_v21 = vadd.f32 %v3166_v45, %v1002_v32  ;;  %v798_v32 = vadd.f32 %v3004_v43, %v797_v48 }
 0x1cc   :  { %v3196_v6 = vpop.f32.mrf.mxu2 }
 0x1cd   :  { %v1056_v61 = vmax.f32 %v1031_v21, 0.0  ;;  %v890_v44 = vadd.f32 %v889_v3, %v798_v32 }
 0x1ce   :  { %v800_v15 = vpop.f32.mrf.mxu1 }
 0x1d1   :  { %1892 = vmatmul.msk.f32.gmra.mxu2 %vm937_vm6, %v1054_v52  ;;  %v1003_v52 = vmul.f32 %v884_v49, %v2700_v5  ;;  %v1004_v49 = vmul.f32 %v887_v62, %v2703_v39 }
 0x1d3   :  { %v1032_v13 = vadd.f32 %v3166_v45, %v1003_v52  ;;  %v3844_v52 = vld [vmem:[#allocation14_spill] sm:$0xff] }
 0x1d4   :  { %v898_v37 = vpop.f32.mrf.mxu2 }
 0x1d5   :  { %v1057_v21 = vmax.f32 %v1032_v13, 0.0 }
 0x1d6   :  { %v803_v31 = vpop.f32.mrf.mxu1 }
 0x1d9   :  { %1893 = vmatmul.msk.f32.gmra.mxu2 %vm937_vm6, %v1055_v26 }
 0x1dc   :  { %v901_v17 = vpop.f32.mrf.mxu2 }
 0x1de   :  { %v806_v25 = vpop.f32.mrf.mxu1 }
 0x1df   :  { %v807_v59 = vadd.f32 %v3004_v43, %v806_v25 }
 0x1e1   :  { %v899_v34 = vadd.f32 %v898_v37, %v807_v59  ;;  %1894 = vmatmul.msk.f32.gmra.mxu2 %vm937_vm6, %v1056_v61  ;;  %v1033_v61 = vadd.f32 %v3166_v45, %v1004_v49 }
 0x1e3   :  { %v1008_v58 = vmul.f32 %v899_v34, %v2900_v41  ;;  %v1005_v34 = vmul.f32 %v890_v44, %v2779_v9  ;;  %v1058_v62 = vmax.f32 %v1033_v61, 0.0  ;;  %v804_v61 = vadd.f32 %v3004_v43, %v803_v31 }
 0x1e4   :  { %v904_v26 = vpop.f32.mrf.mxu2 }
 0x1e5   :  { %v1037_v19 = vadd.f32 %v3166_v45, %v1008_v58  ;;  %v801_v58 = vadd.f32 %v3004_v43, %v800_v15  ;;  %v1034_v3 = vadd.f32 %v3166_v45, %v1005_v34  ;;  %v896_v34 = vadd.f32 %v3196_v6, %v804_v61 }
 0x1e6   :  { %v809_v38 = vpop.f32.mrf.mxu1 }
 0x1e7   :  { %v810_v56 = vadd.f32 %v3004_v43, %v809_v38  ;;  %v1062_v25 = vmax.f32 %v1037_v19, 0.0  ;;  %v893_v32 = vadd.f32 %v3189_v53, %v801_v58  ;;  %v1007_v31 = vmul.f32 %v896_v34, %v2820_v30 }
 0x1e9   :  { %v902_v37 = vadd.f32 %v901_v17, %v810_v56  ;;  %1895 = vmatmul.msk.f32.gmra.mxu2 %vm937_vm6, %v1057_v21  ;;  %1900 = vmatmul.msk.f32.vlgmr.msra.gmra.mxu3 %vm937_vm6, %v1062_v25  ;;  %v3845_v21 = vld [vmem:[#allocation11_spill] sm:$0xff]  ;;  %v1006_v15 = vmul.f32 %v893_v32, %v2815_v14 }
 0x1eb   :  { %v1009_v10 = vmul.f32 %v902_v37, %v3844_v52  ;;  %v1059_v37 = vmax.f32 %v1034_v3, 0.0  ;;  %v1035_v53 = vadd.f32 %v3166_v45, %v1006_v15 }
 0x1ec   :  { %v907_v59 = vpop.f32.mrf.mxu2 }
 0x1ed   :  { %v1038_v48 = vadd.f32 %v3166_v45, %v1009_v10 }
 0x1ee   :  { %v812_v13 = vpop.f32.mrf.mxu1 }
 0x1ef   :  { %v813_v17 = vadd.f32 %v3004_v43, %v812_v13  ;;  %v1063_v19 = vmax.f32 %v1038_v48, 0.0  ;;  %v3846_v13 = vld [vmem:[#allocation10_spill] sm:$0xff] }
 0x1f1   :  { %v905_v38 = vadd.f32 %v904_v26, %v813_v17  ;;  %1896 = vmatmul.msk.f32.gmra.mxu2 %vm937_vm6, %v1058_v62  ;;  %1901 = vmatmul.msk.f32.gmra.mxu3 %vm937_vm6, %v1063_v19 }
 0x1f3   :  { %v1010_v49 = vmul.f32 %v905_v38, %v3845_v21  ;;  %v1060_v38 = vmax.f32 %v1035_v53, 0.0 }
 0x1f4   :  { %v910_v56 = vpop.f32.mrf.mxu2 }
 0x1f5   :  { %v1039_v25 = vadd.f32 %v3166_v45, %v1010_v49  ;;  %v1036_v49 = vadd.f32 %v3166_v45, %v1007_v31 }
 0x1f6   :  { %v815_v44 = vpop.f32.mrf.mxu1 }
 0x1f7   :  { %v816_v26 = vadd.f32 %v3004_v43, %v815_v44  ;;  %v1064_v10 = vmax.f32 %v1039_v25, 0.0  ;;  %v1061_v15 = vmax.f32 %v1036_v49, 0.0 }
 0x1f9   :  { %v908_v48 = vadd.f32 %v907_v59, %v816_v26  ;;  %1897 = vmatmul.msk.f32.gmra.mxu2 %vm937_vm6, %v1059_v37  ;;  %1902 = vmatmul.msk.f32.gmra.mxu3 %vm937_vm6, %v1064_v10 }
 0x1fb   :  { %v1011_v62 = vmul.f32 %v908_v48, %v3846_v13 }
 0x1fc   :  { %v913_v58 = vpop.f32.mrf.mxu2 }
 0x1fd   :  { %v1040_v17 = vadd.f32 %v3166_v45, %v1011_v62 }
 0x1fe   :  { %v818_v19 = vpop.f32.mrf.mxu1 }
 0x1ff   :  { %v819_v3 = vadd.f32 %v3004_v43, %v818_v19  ;;  %v1065_v59 = vmax.f32 %v1040_v17, 0.0 }
 0x201   :  { %v911_v32 = vadd.f32 %v910_v56, %v819_v3  ;;  %1898 = vmatmul.msk.f32.gmra.mxu2 %vm937_vm6, %v1060_v38  ;;  %1903 = vmatmul.msk.f32.gmra.mxu3 %vm937_vm6, %v1065_v59 }
 0x203   :  { %v1012_v6 = vmul.f32 %v911_v32, %v2946_v50 }
 0x204   :  { %v916_v25 = vpop.f32.mrf.mxu2 }
 0x205   :  { %v1041_v37 = vadd.f32 %v3166_v45, %v1012_v6 }
 0x206   :  { %v821_v44 = vpop.f32.mrf.mxu1 }
 0x207   :  { %v822_v61 = vadd.f32 %v3004_v43, %v821_v44  ;;  %v1066_v26 = vmax.f32 %v1041_v37, 0.0 }
 0x209   :  { %v914_v10 = vadd.f32 %v913_v58, %v822_v61  ;;  %1899 = vmatmul.msk.f32.gmra.mxu2 %vm937_vm6, %v1061_v15  ;;  %1904 = vmatmul.msk.f32.gmra.mxu3 %vm937_vm6, %v1066_v26 }
 0x20b   :  { %v1013_v56 = vmul.f32 %v914_v10, %v2943_v16 }
 0x20c   :  { %v919_v48 = vpop.f32.mrf.mxu2 }
 0x20d   :  { %v1042_v53 = vadd.f32 %v3166_v45, %v1013_v56 }
 0x20e   :  { %v824_v34 = vpop.f32.mrf.mxu1 }
 0x20f   :  { %v825_v62 = vadd.f32 %v3004_v43, %v824_v34  ;;  %v1067_v17 = vmax.f32 %v1042_v53, 0.0 }
 0x211   :  { %v917_v19 = vadd.f32 %v916_v25, %v825_v62  ;;  %1905 = vmatmul.msk.f32.gmra.mxu3 %vm937_vm6, %v1067_v17 }
 0x213   :  { %v1014_v38 = vmul.f32 %v917_v19, %v2937_v63 }
 0x214   :  { %v922_v31 = vpop.f32.mrf.mxu2 }
 0x215   :  { %v1043_v58 = vadd.f32 %v3166_v45, %v1014_v38 }
 0x216   :  { %v827_v3 = vpop.f32.mrf.mxu1 }
 0x217   :  { %v828_v59 = vadd.f32 %v3004_v43, %v827_v3  ;;  %v1068_v32 = vmax.f32 %v1043_v58, 0.0 }
 0x219   :  { %v920_v49 = vadd.f32 %v919_v48, %v828_v59  ;;  %1906 = vmatmul.msk.f32.gmra.mxu3 %vm937_vm6, %v1068_v32 }
 0x21b   :  { %v1015_v6 = vmul.f32 %v920_v49, %v2919_v24 }
 0x21c   :  { %v925_v37 = vpop.f32.mrf.mxu2 }
 0x21d   :  { %v1044_v44 = vadd.f32 %v3166_v45, %v1015_v6 }
 0x21e   :  { %v830_v25 = vpop.f32.mrf.mxu1 }
 0x21f   :  { %v831_v15 = vadd.f32 %v3004_v43, %v830_v25  ;;  %v1069_v61 = vmax.f32 %v1044_v44, 0.0 }
 0x221   :  { %v923_v26 = vadd.f32 %v922_v31, %v831_v15  ;;  %1907 = vmatmul.msk.f32.gmra.mxu3 %vm937_vm6, %v1069_v61 }
 0x223   :  { %v1016_v10 = vmul.f32 %v923_v26, %v2905_v36 }
 0x224   :  { %v928_v56 = vpop.f32.mrf.mxu2 }
 0x225   :  { %v1045_v53 = vadd.f32 %v3166_v45, %v1016_v10 }
 0x226   :  { %v833_v48 = vpop.f32.mrf.mxu1 }
 0x227   :  { %v834_v34 = vadd.f32 %v3004_v43, %v833_v48  ;;  %v1070_v62 = vmax.f32 %v1045_v53, 0.0 }
 0x229   :  { %v926_v17 = vadd.f32 %v925_v37, %v834_v34  ;;  %1908 = vmatmul.msk.f32.gmra.mxu3 %vm937_vm6, %v1070_v62 }
 0x22b   :  { %v1017_v19 = vmul.f32 %v926_v17, %v2879_v60 }
 0x22c   :  { %v931_v38 = vpop.f32.mrf.mxu2 }
 0x22d   :  { %v1046_v58 = vadd.f32 %v3166_v45, %v1017_v19 }
 0x22e   :  { %v836_v31 = vpop.f32.mrf.mxu1 }
 0x22f   :  { %v837_v3 = vadd.f32 %v3004_v43, %v836_v31  ;;  %v1071_v59 = vmax.f32 %v1046_v58, 0.0 }
 0x231   :  { %v929_v32 = vadd.f32 %v928_v56, %v837_v3  ;;  %1909 = vmatmul.msk.f32.gmra.mxu3 %vm937_vm6, %v1071_v59 }
 0x233   :  { %v1018_v49 = vmul.f32 %v929_v32, %v2848_v20 }
 0x234   :  { %v934_v6 = vpop.f32.mrf.mxu2 }
 0x235   :  { %v1047_v44 = vadd.f32 %v3166_v45, %v1018_v49 }
 0x236   :  { %v839_v37 = vpop.f32.mrf.mxu1 }
 0x237   :  { %v840_v25 = vadd.f32 %v3004_v43, %v839_v37  ;;  %v1072_v15 = vmax.f32 %v1047_v44, 0.0 }
 0x239   :  { %v932_v61 = vadd.f32 %v931_v38, %v840_v25  ;;  %1910 = vmatmul.msk.f32.gmra.mxu3 %vm937_vm6, %v1072_v15 }
 0x23b   :  { %v1019_v26 = vmul.f32 %v932_v61, %v2800_v27 }
 0x23c   :  { %v1172_v10 = vpop.f32.mrf.mxu2 }
 0x23d   :  { %v1048_v53 = vadd.f32 %v3166_v45, %v1019_v26  ;;  %v1245_v31 = vmul.f32 %v1172_v10, %v3839_v23 }
 0x23e   :  { %v842_v56 = vpop.f32.mrf.mxu1 }
 0x23f   :  { %v843_v48 = vadd.f32 %v3004_v43, %v842_v56  ;;  %v1073_v34 = vmax.f32 %v1048_v53, 0.0 }
 0x241   :  { %v935_v62 = vadd.f32 %v934_v6, %v843_v48  ;;  %1911 = vmatmul.msk.f32.gmra.mxu3 %vm937_vm6, %v1073_v34 }
 0x243   :  { %v1020_v17 = vmul.f32 %v935_v62, %v2809_v46 }
 0x244   :  { %v1175_v19 = vpop.f32.mrf.mxu2 }
 0x245   :  { %v1049_v58 = vadd.f32 %v3166_v45, %v1020_v17  ;;  %v1246_v32 = vmul.f32 %v1175_v19, %v3841_v2 }
 0x246   :  { %v1169_v38 = vpop.f32.mrf.mxu1 }
 0x247   :  { %v1244_v3 = vmul.f32 %v1169_v38, %v3842_v1  ;;  %v1074_v59 = vmax.f32 %v1049_v58, 0.0 }
 0x249   :  { %v1457_v49 = vadd.f32 %v1245_v31, %v1244_v3  ;;  %1912 = vmatmul.msk.f32.gmra.mxu3 %vm937_vm6, %v1074_v59 }
 0x24b   :  { %v1458_v43 = vadd.f32 %v1457_v49, %v1246_v32 }
 0x24c   :  { %v1178_v6 = vpop.f32.mrf.mxu2 }
 0x24d   :  { %v1247_v44 = vmul.f32 %v1178_v6, %v3843_v40 }
 0x24f   :  { %v1459_v37 = vadd.f32 %v1458_v43, %v1247_v44 }
 0x254   :  { %v1181_v25 = vpop.f32.mrf.mxu2 }
 0x255   :  { %v1248_v15 = vmul.f32 %v1181_v25, %v2569_v55 }
 0x257   :  { %v1460_v45 = vadd.f32 %v1459_v37, %v1248_v15 }
 0x25c   :  { %v1184_v61 = vpop.f32.mrf.mxu2 }
 0x264   :  { %v1187_v26 = vpop.f32.mrf.mxu2 }
 0x26c   :  { %v1190_v10 = vpop.f32.mrf.mxu2  ;;  %v1205_v53 = vpop.f32.mrf.mxu3 }
 0x26d   :  { %v1256_v49 = vmul.f32 %v1205_v53, %v2900_v41  ;;  %v1250_v53 = vmul.f32 %v1187_v26, %v2689_v29 }
 0x274   :  { %v1193_v56 = vpop.f32.mrf.mxu2  ;;  %v1208_v48 = vpop.f32.mrf.mxu3 }
 0x275   :  { %v1257_v59 = vmul.f32 %v1208_v48, %v3844_v52  ;;  %v1251_v48 = vmul.f32 %v1190_v10, %v2700_v5 }
 0x27c   :  { %v1196_v34 = vpop.f32.mrf.mxu2  ;;  %v1211_v62 = vpop.f32.mrf.mxu3 }
 0x27d   :  { %v1258_v38 = vmul.f32 %v1211_v62, %v3845_v21  ;;  %v1253_v55 = vmul.f32 %v1196_v34, %v2779_v9 }
 0x284   :  { %v1199_v17 = vpop.f32.mrf.mxu2  ;;  %v1214_v19 = vpop.f32.mrf.mxu3 }
 0x285   :  { %v1259_v58 = vmul.f32 %v1214_v19, %v3846_v13  ;;  %v1254_v25 = vmul.f32 %v1199_v17, %v2815_v14  ;;  %v1252_v19 = vmul.f32 %v1193_v56, %v2703_v39  ;;  %v1249_v13 = vmul.f32 %v1184_v61, %v2589_v28 }
 0x287   :  { %1273 = vmatpush.msrb.mxu0 %v1259_v58  ;;  %v1461_v17 = vadd.f32 %v1460_v45, %v1249_v13 }
 0x289   :  { %1274 = vmatpush.msrb.mxu0 %v1258_v38  ;;  %v1462_v21 = vadd.f32 %v1461_v17, %v1250_v53 }
 0x28b   :  { %1275 = vmatpush.msrb.mxu0 %v1257_v59  ;;  %v1463_v34 = vadd.f32 %v1462_v21, %v1251_v48 }
 0x28c   :  { %v1202_v43 = vpop.f32.mrf.mxu2  ;;  %v1217_v6 = vpop.f32.mrf.mxu3 }
 0x28d   :  { %v1255_v37 = vmul.f32 %v1202_v43, %v2820_v30  ;;  %1276 = vmatpush.msrb.mxu0 %v1256_v49  ;;  %v1464_v56 = vadd.f32 %v1463_v34, %v1252_v19  ;;  %v3312_v34 = vld [vmem:[#allocation3] ss:$0 sm:$0xff] }
 0x28f   :  { %1277 = vmatpush.msrb.mxu0 %v1255_v37  ;;  %v1465_v41 = vadd.f32 %v1464_v56, %v1253_v55  ;;  %v3849_v56 = vld [vmem:[#allocation31_spill] sm:$0xff] }
 0x291   :  { %1278 = vmatpush.msrb.mxu0 %v1254_v25  ;;  %v1466_v26 = vadd.f32 %v1465_v41, %v1254_v25 }
 0x293   :  { %1279 = vmatpush.msrb.mxu0 %v1253_v55  ;;  %v1467_v10 = vadd.f32 %v1466_v26, %v1255_v37  ;;  %v3856_v26 = vld [vmem:[#allocation39_spill] sm:$0xff] }
 0x294   :  { %v1220_v62 = vpop.f32.mrf.mxu3 }
 0x295   :  { %1280 = vmatpush.msrb.mxu0 %v1252_v19  ;;  %v1468_v61 = vadd.f32 %v1467_v10, %v1256_v49  ;;  %v1261_v41 = vmul.f32 %v1220_v62, %v2943_v16  ;;  %v3857_v10 = vld [vmem:[#allocation15_spill] sm:$0xff] }
 0x297   :  { %1281 = vmatpush.msrb.mxu0 %v1251_v48  ;;  %v1469_v14 = vadd.f32 %v1468_v61, %v1257_v59  ;;  %v3858_v61 = vld [vmem:[#allocation41_spill] sm:$0xff] }
 0x299   :  { %1282 = vmatpush.msrb.mxu0 %v1250_v53 }
 0x29b   :  { %1283 = vmatpush.msrb.mxu0 %v1249_v13 }
 0x29c   :  { %v1223_v43 = vpop.f32.mrf.mxu3 }
 0x29d   :  { %1284 = vmatpush.msrb.mxu0 %v1248_v15  ;;  %v1470_v15 = vadd.f32 %v1469_v14, %v1258_v38  ;;  %v1262_v55 = vmul.f32 %v1223_v43, %v2937_v63  ;;  %v1269_v43 = vld [vmem:[#allocation3] sm:$0x1] }
 0x29f   :  { %1285 = vmatpush.msrb.mxu0 %v1247_v44  ;;  %v1471_v21 = vadd.f32 %v1470_v15, %v1259_v58  ;;  %v3860_v15 = vld [vmem:[#allocation43_spill] sm:$0xff] }
 0x2a1   :  { %1286 = vmatpush.msrb.mxu0 %v1246_v32  ;;  %v1260_v32 = vmul.f32 %v1217_v6, %v2946_v50 }
 0x2a3   :  { %1287 = vmatpush.msrb.mxu0 %v1245_v31  ;;  %v1472_v44 = vadd.f32 %v1471_v21, %v1260_v32  ;;  %v3861_v21 = vld [vmem:[#allocation13_spill] sm:$0xff] }
 0x2a4   :  { %v1226_v52 = vpop.f32.mrf.mxu3 }
 0x2a5   :  { %1288 = vmatpush.msrb.mxu0 %v1244_v3  ;;  %v1473_v3 = vadd.f32 %v1472_v44, %v1261_v41  ;;  %v3864_v44 = vld [vmem:[#allocation47_spill] sm:$0xff] }
 0x2a6   :  { %1289 = vmatmul.f32.vlgmr.msrb.gmra.mxu0 %v2987_v54  ;;  %v1263_v54 = vmul.f32 %v1226_v52, %v2919_v24 }
 0x2a7   :  { %v1474_v45 = vadd.f32 %v1473_v3, %v1262_v55  ;;  %v3867_v3 = vld [vmem:[#allocation33_spill] sm:$0xff] }
 0x2a9   :  { %v1475_v58 = vadd.f32 %v1474_v45, %v1263_v54  ;;  %v3868_v45 = vld [vmem:[#allocation51_spill] sm:$0xff] }
 0x2ac   :  { %v1229_v30 = vpop.f32.mrf.mxu3 }
 0x2ae   :  { %1292 = vmatmul.f32.gmra.mxu0 %v2997_v8  ;;  %v1264_v8 = vmul.f32 %v1229_v30, %v2905_v36 }
 0x2b0   :  { %v1476_v59 = vadd.f32 %v1475_v58, %v1264_v8  ;;  %v3870_v58 = vld [vmem:[#allocation53_spill] sm:$0xff] }
 0x2b4   :  { %v1232_v13 = vpop.f32.mrf.mxu3 }
 0x2b6   :  { %1295 = vmatmul.f32.gmra.mxu0 %v3006_v22  ;;  %v1265_v22 = vmul.f32 %v1232_v13, %v2879_v60  ;;  %v3859_v13 = vld [vmem:[#allocation18_spill] sm:$0xff] }
 0x2b8   :  { %v1477_v49 = vadd.f32 %v1476_v59, %v1265_v22 }
 0x2bc   :  { %v1235_v31 = vpop.f32.mrf.mxu3 }
 0x2bd   :  { %v1266_v38 = vmul.f32 %v1235_v31, %v2848_v20  ;;  %v3863_v31 = vld [vmem:[#allocation17_spill] sm:$0xff] }
 0x2be   :  { %1298 = vmatmul.f32.gmra.mxu0 %v3014_v18 }
 0x2bf   :  { %v1478_v6 = vadd.f32 %v1477_v49, %v1266_v38  ;;  %v3873_v49 = vld [vmem:[#allocation38_spill] sm:$0xff] }
 0x2c4   :  { %v1238_v14 = vpop.f32.mrf.mxu3 }
 0x2c5   :  { %v1267_v18 = vmul.f32 %v1238_v14, %v2800_v27  ;;  %v3869_v14 = vld [vmem:[#allocation28_spill] sm:$0xff] }
 0x2c6   :  { %1301 = vmatmul.f32.gmra.mxu0 %v3021_v0 }
 0x2c7   :  { %v1479_v25 = vadd.f32 %v1478_v6, %v1267_v18 }
 0x2cc   :  { %v1241_v37 = vpop.f32.mrf.mxu3 }
 0x2cd   :  { %v1268_v52 = vmul.f32 %v1241_v37, %v2809_v46 }
 0x2ce   :  { %1304 = vmatmul.f32.gmra.mxu0 %v3028_v11 }
 0x2cf   :  { %1372 = vmatpush.msrb.mxu3 %v1268_v52  ;;  %v1480_v30 = vadd.f32 %v1479_v25, %v1268_v52 }
 0x2d1   :  { %1373 = vmatpush.msrb.mxu3 %v1267_v18  ;;  %v1481_v19 = vrot.slane %v1480_v30, 4  ;;  %v3872_v18 = vld [vmem:[#allocation20_spill] sm:$0xff] }
 0x2d3   :  { %1374 = vmatpush.msrb.mxu3 %v1266_v38  ;;  %v1482_v62 = vadd.f32 %v1481_v19, %v1480_v30  ;;  %v3871_v38 = vld [vmem:[#allocation36_spill] sm:$0xff]  ;;  %v3369_v30 = vld [vmem:[%s3670_s5] ss:$0 sm:$0xff]  ;;  %s2160_s5 = smov [#allocation7]  }
 0x2d4   :  { %s1822_s8 = sshll.u32 %s2160_s5, 4  ;;  %s1823_s8 = int_to_ptr.vmem [resolvable:$true] %s1822_s8 }
 0x2d5   :  { %1375 = vmatpush.msrb.mxu3 %v1265_v22  ;;  %v1483_v0 = vrot.slane %v1482_v62, 2 }
 0x2d6   :  { %1307 = vmatmul.f32.gmra.mxu0 %v3035_v47  ;;  %v3847_v47 = vld [vmem:[#allocation29_spill] sm:$0xff] }
 0x2d7   :  { %1376 = vmatpush.msrb.mxu3 %v1264_v8  ;;  %v1484_v48 = vadd.f32 %v1483_v0, %v1482_v62  ;;  %v3874_v62 = vld [vmem:[#allocation40_spill] sm:$0xff] }
 0x2d9   :  { %1377 = vmatpush.msrb.mxu3 %v1263_v54  ;;  %v1485_v53 = vrot.slane %v1484_v48, 1  ;;  %v3866_v54 = vld [vmem:[#allocation49_spill] sm:$0xff] }
 0x2db   :  { %1378 = vmatpush.msrb.mxu3 %v1262_v55  ;;  %v1486_v17 = vadd.f32 %v1485_v53, %v1484_v48  ;;  %v3865_v55 = vld [vmem:[#allocation16_spill] sm:$0xff] }
 0x2dd   :  { %1379 = vmatpush.msrb.mxu3 %v1261_v41  ;;  %v1487_v11 = vadd.f32 %v1486_v17, %v1269_v43 }
 0x2de   :  { %1310 = vmatmul.f32.gmra.mxu0 %v3042_v42  ;;  %v3848_v42 = vld [vmem:[#allocation12_spill] sm:$0xff] }
 0x2df   :  { %1380 = vmatpush.msrb.mxu3 %v1260_v32  ;;  %1488 = vst [vmem:[#allocation3] sm:$0x1] %v1487_v11  ;;  %v3862_v32 = vld [vmem:[#allocation45_spill] sm:$0xff] }
 0x2e0   :  { %1913 = vmatmul.msk.f32.vlgmr.msrb.gmra.mxu3 %vm677_vm2, %v2961_v57  ;;  %v3850_v57 = vld [vmem:[#allocation32_spill] sm:$0xff] }
 0x2e6   :  { %1313 = vmatmul.f32.gmra.mxu0 %v3049_v7  ;;  %v3851_v7 = vld [vmem:[#allocation23_spill] sm:$0xff] }
 0x2e8   :  { %1914 = vmatmul.msk.f32.gmra.mxu3 %vm677_vm2, %v2973_v51  ;;  %v3852_v51 = vld [vmem:[#allocation26_spill] sm:$0xff] }
 0x2ee   :  { %1316 = vmatmul.f32.gmra.mxu0 %v3056_v35  ;;  %v3853_v35 = vld [vmem:[#allocation25_spill] sm:$0xff] }
 0x2f0   :  { %1915 = vmatmul.msk.f32.gmra.mxu3 %vm677_vm2, %v2989_v33  ;;  %v3854_v33 = vld [vmem:[#allocation37_spill] sm:$0xff] }
 0x2f6   :  { %1319 = vmatmul.f32.gmra.mxu0 %v3063_v12  ;;  %v3855_v12 = vld [vmem:[#allocation24_spill] sm:$0xff] }
 0x2f8   :  { %1916 = vmatmul.msk.f32.gmra.mxu3 %vm677_vm2, %v3847_v47  ;;  %v3875_v47 = vld [vmem:[#allocation42_spill] sm:$0xff] }
 0x2fe   :  { %1322 = vmatmul.f32.gmra.mxu0 %v3848_v42 }
 0x300   :  { %1917 = vmatmul.msk.f32.gmra.mxu3 %vm677_vm2, %v3849_v56 }
 0x306   :  { %1325 = vmatmul.f32.gmra.mxu0 %v3850_v57 }
 0x308   :  { %1918 = vmatmul.msk.f32.gmra.mxu3 %vm677_vm2, %v3851_v7 }
 0x30e   :  { %1328 = vmatmul.f32.gmra.mxu0 %v3852_v51  ;;  %v3876_v51 = vld [vmem:[#allocation44_spill] sm:$0xff] }
 0x310   :  { %1919 = vmatmul.msk.f32.gmra.mxu3 %vm677_vm2, %v3853_v35 }
 0x316   :  { %1331 = vmatmul.f32.gmra.mxu0 %v3854_v33 }
 0x318   :  { %1920 = vmatmul.msk.f32.gmra.mxu3 %vm677_vm2, %v3855_v12 }
 0x31e   :  { %1334 = vmatmul.f32.gmra.mxu0 %v3856_v26 }
 0x320   :  { %1921 = vmatmul.msk.f32.gmra.mxu3 %vm677_vm2, %v3857_v10 }
 0x323   :  { %v1290_v41 = vpop.f32.mrf.mxu0 }
 0x324   :  { %v1291_v6 = vadd.f32 %v3312_v34, %v1290_v41 }
 0x326   :  { %1337 = vmatmul.f32.gmra.mxu0 %v3858_v61  ;;  %v3877_v61 = vld [vmem:[#allocation46_spill] sm:$0xff] }
 0x328   :  { %1922 = vmatmul.msk.f32.gmra.mxu3 %vm677_vm2, %v3859_v13 }
 0x32b   :  { %v1293_v8 = vpop.f32.mrf.mxu0 }
 0x32c   :  { %v1294_v0 = vadd.f32 %v3312_v34, %v1293_v8 }
 0x32e   :  { %1340 = vmatmul.f32.gmra.mxu0 %v3860_v15 }
 0x330   :  { %1923 = vmatmul.msk.f32.gmra.mxu3 %vm677_vm2, %v3861_v21 }
 0x333   :  { %v1296_v22 = vpop.f32.mrf.mxu0 }
 0x336   :  { %1343 = vmatmul.f32.gmra.mxu0 %v3862_v32 }
 0x338   :  { %1924 = vmatmul.msk.f32.gmra.mxu3 %vm677_vm2, %v3863_v31  ;;  %v3878_v31 = vld [vmem:[#allocation27_spill] sm:$0xff] }
 0x33b   :  { %v1299_v59 = vpop.f32.mrf.mxu0 }
 0x33e   :  { %1346 = vmatmul.f32.gmra.mxu0 %v3864_v44 }
 0x340   :  { %1925 = vmatmul.msk.f32.gmra.mxu3 %vm677_vm2, %v3865_v55  ;;  %v3879_v55 = vld [vmem:[#allocation48_spill] sm:$0xff] }
 0x343   :  { %v1302_v37 = vpop.f32.mrf.mxu0 }
 0x346   :  { %1349 = vmatmul.f32.gmra.mxu0 %v3866_v54 }
 0x348   :  { %1926 = vmatmul.msk.f32.gmra.mxu3 %vm677_vm2, %v3867_v3 }
 0x34b   :  { %v1305_v53 = vpop.f32.mrf.mxu0 }
 0x34e   :  { %1352 = vmatmul.f32.gmra.mxu0 %v3868_v45 }
 0x350   :  { %1927 = vmatmul.msk.f32.gmra.mxu3 %vm677_vm2, %v3869_v14  ;;  %v3880_v14 = vld [vmem:[#allocation50_spill] sm:$0xff] }
 0x353   :  { %v1308_v42 = vpop.f32.mrf.mxu0 }
 0x356   :  { %1355 = vmatmul.f32.gmra.mxu0 %v3870_v58 }
 0x358   :  { %1928 = vmatmul.msk.f32.gmra.mxu3 %vm677_vm2, %v3871_v38 }
 0x35b   :  { %v1311_v33 = vpop.f32.mrf.mxu0 }
 0x35e   :  { %1358 = vmatmul.f32.gmra.mxu0 %v3872_v18 }
 0x360   :  { %1929 = vmatmul.msk.f32.gmra.mxu3 %vm677_vm2, %v3873_v49 }
 0x363   :  { %v1382_v52 = vpop.f32.mrf.mxu3  ;;  %v1314_v15 = vpop.f32.mrf.mxu0 }
 0x364   :  { %v1383_v25 = vadd.f32 %v1382_v52, %v1291_v6  ;;  %v3881_v6 = vld [vmem:[#allocation52_spill] sm:$0xff] }
 0x366   :  { %v1489_v19 = vmul.f32 %v1383_v25, %v3842_v1  ;;  %1361 = vmatmul.f32.gmra.mxu0 %v3179_v4  ;;  %v1297_v4 = vadd.f32 %v3312_v34, %v1296_v22  ;;  %v1309_v22 = vadd.f32 %v3312_v34, %v1308_v42 }
 0x368   :  { %1930 = vmatmul.msk.f32.gmra.mxu3 %vm677_vm2, %v3874_v62  ;;  %v3377_v48 = vadd.f32 %v3369_v30, %v1489_v19 }
 0x36a   :  { %1543 = vmax.xlane.f32.xlu0 %v3377_v48 }
 0x36b   :  { %v1385_v43 = vpop.f32.mrf.mxu3  ;;  %v1317_v54 = vpop.f32.mrf.mxu0 }
 0x36c   :  { %v1386_v17 = vadd.f32 %v1385_v43, %v1294_v0  ;;  %v3882_v0 = vld [vmem:[#allocation54_spill] sm:$0xff] }
 0x36e   :  { %v1490_v11 = vmul.f32 %v1386_v17, %v3839_v23  ;;  %v1300_v23 = vadd.f32 %v3312_v34, %v1299_v59 }
 0x370   :  { %1931 = vmatmul.msk.f32.gmra.mxu3 %vm677_vm2, %v3875_v47  ;;  %v3385_v1 = vadd.f32 %v3369_v30, %v1490_v11 }
 0x372   :  { %1545 = vmax.xlane.f32.xlu0 %v3385_v1 }
 0x373   :  { %v1388_v56 = vpop.f32.mrf.mxu3  ;;  %v1320_v38 = vpop.f32.mrf.mxu0 }
 0x374   :  { %v1389_v57 = vadd.f32 %v1388_v56, %v1297_v4  ;;  %v1318_v4 = vadd.f32 %v3312_v34, %v1317_v54 }
 0x376   :  { %v1491_v7 = vmul.f32 %v1389_v57, %v3841_v2  ;;  %v1303_v2 = vadd.f32 %v3312_v34, %v1302_v37 }
 0x378   :  { %1932 = vmatmul.msk.f32.gmra.mxu3 %vm677_vm2, %v3876_v51  ;;  %v3393_v35 = vadd.f32 %v3369_v30, %v1491_v7  ;;  %v1321_v51 = vadd.f32 %v3312_v34, %v1320_v38 }
 0x37a   :  { %1547 = vmax.xlane.f32.xlu1 %v3393_v35 }
 0x37b   :  { %v1391_v12 = vpop.f32.mrf.mxu3  ;;  %v1323_v25 = vpop.f32.mrf.mxu0 }
 0x37c   :  { %v1392_v26 = vadd.f32 %v1391_v12, %v1300_v23  ;;  %v3883_v12 = vld [vmem:[#allocation34_spill] sm:$0xff] }
 0x37e   :  { %v1492_v10 = vmul.f32 %v1392_v26, %v3843_v40  ;;  %v1306_v40 = vadd.f32 %v3312_v34, %v1305_v53 }
 0x380   :  { %1933 = vmatmul.msk.f32.gmra.mxu3 %vm677_vm2, %v3877_v61  ;;  %v3401_v13 = vadd.f32 %v3369_v30, %v1492_v10  ;;  %v1324_v10 = vadd.f32 %v3312_v34, %v1323_v25 }
 0x382   :  { %1549 = vmax.xlane.f32.xlu1 %v3401_v13 }
 0x383   :  { %v1394_v21 = vpop.f32.mrf.mxu3  ;;  %v1326_v11 = vpop.f32.mrf.mxu0 }
 0x384   :  { %v1395_v32 = vadd.f32 %v1394_v21, %v1303_v2  ;;  %v3884_v21 = vld [vmem:[#allocation35_spill] sm:$0xff] }
 0x386   :  { %v1493_v44 = vmul.f32 %v1395_v32, %v3878_v31  ;;  %v1327_v31 = vadd.f32 %v3312_v34, %v1326_v11 }
 0x388   :  { %1934 = vmatmul.msk.f32.gmra.mxu3 %vm677_vm2, %v3879_v55  ;;  %v3409_v41 = vadd.f32 %v3369_v30, %v1493_v44 }
 0x38a   :  { %1551 = vmax.xlane.f32.xlu2 %v3409_v41 }
 0x38b   :  { %v1397_v3 = vpop.f32.mrf.mxu3  ;;  %v1329_v7 = vpop.f32.mrf.mxu0 }
 0x38c   :  { %v1398_v8 = vadd.f32 %v1397_v3, %v1306_v40  ;;  %v3885_v3 = vld [vmem:[#allocation22_spill] sm:$0xff] }
 0x38e   :  { %v1494_v45 = vmul.f32 %v1398_v8, %v2589_v28  ;;  %v1312_v28 = vadd.f32 %v3312_v34, %v1311_v33 }
 0x390   :  { %1935 = vmatmul.msk.f32.gmra.mxu3 %vm677_vm2, %v3880_v14  ;;  %v3417_v58 = vadd.f32 %v3369_v30, %v1494_v45  ;;  %v1330_v45 = vadd.f32 %v3312_v34, %v1329_v7 }
 0x392   :  { %1553 = vmax.xlane.f32.xlu2 %v3417_v58 }
 0x393   :  { %v1400_v59 = vpop.f32.mrf.mxu3  ;;  %v1332_v2 = vpop.f32.mrf.mxu0 }
 0x394   :  { %v1401_v18 = vadd.f32 %v1400_v59, %v1309_v22 }
 0x396   :  { %v1495_v49 = vmul.f32 %v1401_v18, %v2689_v29  ;;  %v1315_v29 = vadd.f32 %v3312_v34, %v1314_v15  ;;  %v3886_v18 = vld [vmem:[#allocation14_spill] sm:$0xff] }
 0x398   :  { %1936 = vmatmul.msk.f32.gmra.mxu3 %vm677_vm2, %v3881_v6  ;;  %v3425_v37 = vadd.f32 %v3369_v30, %v1495_v49  ;;  %v1333_v6 = vadd.f32 %v3312_v34, %v1332_v2 }
 0x39a   :  { %1555 = vmax.xlane.f32.xlu0 %v3425_v37 }
 0x39b   :  { %v1403_v52 = vpop.f32.mrf.mxu3  ;;  %v1335_v40 = vpop.f32.mrf.mxu0 }
 0x39c   :  { %v1404_v19 = vadd.f32 %v1403_v52, %v1312_v28 }
 0x39e   :  { %v1496_v62 = vmul.f32 %v1404_v19, %v2700_v5  ;;  %v3887_v19 = vld [vmem:[#allocation11_spill] sm:$0xff] }
 0x3a0   :  { %1937 = vmatmul.msk.f32.gmra.mxu3 %vm677_vm2, %v3882_v0  ;;  %v3433_v53 = vadd.f32 %v3369_v30, %v1496_v62 }
 0x3a2   :  { %1557 = vmax.xlane.f32.xlu1 %v3433_v53 }
 0x3a3   :  { %v1406_v43 = vpop.f32.mrf.mxu3  ;;  %v1338_v59 = vpop.f32.mrf.mxu0 }
 0x3a4   :  { %v1407_v17 = vadd.f32 %v1406_v43, %v1315_v29  ;;  %v1336_v29 = vadd.f32 %v3312_v34, %v1335_v40 }
 0x3a6   :  { %v1497_v47 = vmul.f32 %v1407_v17, %v2703_v39 }
 0x3a8   :  { %v3439_v42 = vadd.f32 %v3369_v30, %v1497_v47 }
 0x3aa   :  { %1559 = vmax.xlane.f32.xlu2 %v3439_v42 }
 0x3ab   :  { %v1409_v5 = vpop.f32.mrf.mxu3  ;;  %v1341_v0 = vpop.f32.mrf.mxu0 }
 0x3ac   :  { %v1410_v56 = vadd.f32 %v1409_v5, %v1318_v4  ;;  %v3888_v4 = vld [vmem:[#allocation10_spill] sm:$0xff] }
 0x3ae   :  { %v1498_v57 = vmul.f32 %v1410_v56, %v2779_v9 }
 0x3b0   :  { %v3445_v23 = vadd.f32 %v3369_v30, %v1498_v57 }
 0x3b2   :  { %1561 = vmax.xlane.f32.xlu0 %v3445_v23 }
 0x3b3   :  { %v1412_v39 = vpop.f32.mrf.mxu3 }
 0x3b4   :  { %v1413_v33 = vadd.f32 %v1412_v39, %v1321_v51  ;;  %v1344_v51 = vpop.f32.mrf.mxu0  ;;  %v1339_v39 = vadd.f32 %v3312_v34, %v1338_v59 }
 0x3b6   :  { %v1499_v26 = vmul.f32 %v1413_v33, %v3883_v12 }
 0x3b8   :  { %v3451_v61 = vadd.f32 %v3369_v30, %v1499_v26 }
 0x3ba   :  { %1563 = vmax.xlane.f32.xlu1 %v3451_v61 }
 0x3bb   :  { %v1415_v9 = vpop.f32.mrf.mxu3 }
 0x3bc   :  { %v1416_v15 = vadd.f32 %v1415_v9, %v1324_v10 }
 0x3be   :  { %v1500_v32 = vmul.f32 %v1416_v15, %v3884_v21  ;;  %v1342_v15 = vadd.f32 %v3312_v34, %v1341_v0 }
 0x3c0   :  { %v3457_v44 = vadd.f32 %v3369_v30, %v1500_v32  ;;  %v1347_v32 = vpop.f32.mrf.mxu0 }
 0x3c2   :  { %1565 = vmax.xlane.f32.xlu2 %v3457_v44 }
 0x3c3   :  { %v1418_v55 = vpop.f32.mrf.mxu3 }
 0x3c4   :  { %v1419_v54 = vadd.f32 %v1418_v55, %v1327_v31 }
 0x3c6   :  { %v1501_v8 = vmul.f32 %v1419_v54, %v3885_v3 }
 0x3c8   :  { %v3463_v14 = vadd.f32 %v3369_v30, %v1501_v8  ;;  %v1345_v8 = vadd.f32 %v3312_v34, %v1344_v51 }
 0x3ca   :  { %1567 = vmax.xlane.f32.xlu0 %v3463_v14 }
 0x3cb   :  { %v1421_v22 = vpop.f32.mrf.mxu3 }
 0x3cc   :  { %v1422_v38 = vadd.f32 %v1421_v22, %v1330_v45 }
 0x3ce   :  { %v1502_v49 = vmul.f32 %v1422_v38, %v3886_v18  ;;  %v1350_v38 = vpop.f32.mrf.mxu0 }
 0x3d0   :  { %v3469_v28 = vadd.f32 %v3369_v30, %v1502_v49 }
 0x3d2   :  { %1569 = vmax.xlane.f32.xlu1 %v3469_v28 }
 0x3d3   :  { %v1424_v52 = vpop.f32.mrf.mxu3 }
 0x3d4   :  { %v1425_v25 = vadd.f32 %v1424_v52, %v1333_v6  ;;  %v1348_v52 = vadd.f32 %v3312_v34, %v1347_v32 }
 0x3d6   :  { %v1503_v62 = vmul.f32 %v1425_v25, %v3887_v19 }
 0x3d8   :  { %v3475_v43 = vadd.f32 %v3369_v30, %v1503_v62  ;;  %v1353_v62 = vpop.f32.mrf.mxu0 }
 0x3da   :  { %1571 = vmax.xlane.f32.xlu2 %v3475_v43 }
 0x3db   :  { %v1427_v17 = vpop.f32.mrf.mxu3 }
 0x3dc   :  { %v1428_v11 = vadd.f32 %v1427_v17, %v1336_v29  ;;  %v1351_v29 = vadd.f32 %v3312_v34, %v1350_v38 }
 0x3dd   :  { %v1544_v47 = vpop.xlane.xlu0 %1543 }
 0x3de   :  { %v1504_v5 = vmul.f32 %v1428_v11, %v3888_v4  ;;  %v3480_v56 = vsub.f32 %v3377_v48, %v1544_v47 }
 0x3e0   :  { %v1618_v57 = vmul.f32 1.442695, %v3480_v56  ;;  %v3484_v7 = vadd.f32 %v3369_v30, %v1504_v5  ;;  %v1354_v5 = vadd.f32 %v3312_v34, %v1353_v62  ;;  %v1356_v51 = vpop.f32.mrf.mxu0 }
 0x3e2   :  { %2004 = vpow2.f32 %v1618_v57  ;;  %1573 = vmax.xlane.f32.xlu0 %v3484_v7 }
 0x3e3   :  { %v1430_v33 = vpop.f32.mrf.mxu3 }
 0x3e4   :  { %v1431_v10 = vadd.f32 %v1430_v33, %v1339_v39 }
 0x3e5   :  { %v1546_v12 = vpop.xlane.xlu0 %1545 }
 0x3e6   :  { %v3489_v26 = vsub.f32 %v3385_v1, %v1546_v12  ;;  %v1505_v9 = vmul.f32 %v1431_v10, %v2946_v50 }
 0x3e8   :  { %v2005_v2 = vpop.eup %2004  ;;  %v1620_v48 = vmul.f32 1.442695, %v3489_v26  ;;  %v3498_v1 = vadd.f32 %v3369_v30, %v1505_v9  ;;  %v1359_v9 = vpop.f32.mrf.mxu0 }
 0x3e9   :  { %1668 = vadd.xlane.f32.xlu1 %v2005_v2 }
 0x3ea   :  { %2006 = vpow2.f32 %v1620_v48 }
 0x3eb   :  { %v1433_v21 = vpop.f32.mrf.mxu3 }
 0x3ec   :  { %v1434_v40 = vadd.f32 %v1433_v21, %v1342_v15 }
 0x3ed   :  { %v1548_v31 = vpop.xlane.xlu1 %1547 }
 0x3ee   :  { %v3495_v55 = vsub.f32 %v3393_v35, %v1548_v31  ;;  %v1506_v50 = vmul.f32 %v1434_v40, %v2943_v16 }
 0x3f0   :  { %v2007_v54 = vpop.eup %2006  ;;  %v1622_v3 = vmul.f32 1.442695, %v3495_v55  ;;  %v3508_v18 = vadd.f32 %v3369_v30, %v1506_v50  ;;  %v1362_v50 = vpop.f32.mrf.mxu0 }
 0x3f1   :  { %1575 = vmax.xlane.f32.xlu1 %v3498_v1  ;;  %1670 = vadd.xlane.f32.xlu2 %v2007_v54  ;;  %v1363_v38 = vadd.f32 %v3312_v34, %v1362_v50 }
 0x3f2   :  { %2008 = vpow2.f32 %v1622_v3 }
 0x3f3   :  { %v1436_v45 = vpop.f32.mrf.mxu3 }
 0x3f4   :  { %v1437_v59 = vadd.f32 %v1436_v45, %v1345_v8 }
 0x3f5   :  { %v1550_v22 = vpop.xlane.xlu1 %1549 }
 0x3f6   :  { %v3505_v35 = vsub.f32 %v3401_v13, %v1550_v22  ;;  %v1507_v16 = vmul.f32 %v1437_v59, %v2937_v63 }
 0x3f8   :  { %v2009_v49 = vpop.eup %2008  ;;  %v1624_v6 = vmul.f32 1.442695, %v3505_v35  ;;  %v3515_v13 = vadd.f32 %v3369_v30, %v1507_v16 }
 0x3f9   :  { %1672 = vadd.xlane.f32.xlu0 %v2009_v49  ;;  %1577 = vmax.xlane.f32.xlu2 %v3508_v18 }
 0x3fa   :  { %2010 = vpow2.f32 %v1624_v6 }
 0x3fb   :  { %v1439_v25 = vpop.f32.mrf.mxu3 }
 0x3fc   :  { %v1440_v19 = vadd.f32 %v1439_v25, %v1348_v52 }
 0x3fd   :  { %v1552_v15 = vpop.xlane.xlu2 %1551 }
 0x3fe   :  { %v1508_v17 = vmul.f32 %v1440_v19, %v2919_v24  ;;  %v3547_v54 = vsub.f32 %v3409_v41, %v1552_v15 }
 0x400   :  { %v2011_v0 = vpop.eup %2010  ;;  %v3522_v4 = vadd.f32 %v3369_v30, %v1508_v17 }
 0x401   :  { %1579 = vmax.xlane.f32.xlu0 %v3515_v13  ;;  %1674 = vadd.xlane.f32.xlu1 %v2011_v0 }
 0x403   :  { %v1442_v11 = vpop.f32.mrf.mxu3 }
 0x404   :  { %v1443_v47 = vadd.f32 %v1442_v11, %v1351_v29 }
 0x405   :  { %v1554_v8 = vpop.xlane.xlu2 %1553 }
 0x406   :  { %v1509_v63 = vmul.f32 %v1443_v47, %v2905_v36  ;;  %v1357_v36 = vadd.f32 %v3312_v34, %v1356_v51  ;;  %v3556_v6 = vsub.f32 %v3417_v58, %v1554_v8 }
 0x408   :  { %v3526_v57 = vadd.f32 %v3369_v30, %v1509_v63  ;;  %v1628_v52 = vmul.f32 1.442695, %v3556_v6 }
 0x409   :  { %1581 = vmax.xlane.f32.xlu1 %v3522_v4 }
 0x40a   :  { %1583 = vmax.xlane.f32.xlu2 %v3526_v57 }
 0x40b   :  { %v1445_v39 = vpop.f32.mrf.mxu3 }
 0x40c   :  { %v1446_v33 = vadd.f32 %v1445_v39, %v1354_v5 }
 0x40d   :  { %v1556_v12 = vpop.xlane.xlu0 %1555 }
 0x40e   :  { %v1510_v24 = vmul.f32 %v1446_v33, %v2879_v60  ;;  %v3537_v2 = vsub.f32 %v3425_v37, %v1556_v12  ;;  %v1360_v60 = vadd.f32 %v3312_v34, %v1359_v9 }
 0x410   :  { %v3533_v10 = vadd.f32 %v3369_v30, %v1510_v24  ;;  %v1630_v31 = vmul.f32 1.442695, %v3537_v2 }
 0x412   :  { %1585 = vmax.xlane.f32.xlu0 %v3533_v10  ;;  %2012 = vpow2.f32 %v1630_v31 }
 0x413   :  { %v1448_v48 = vpop.f32.mrf.mxu3 }
 0x414   :  { %v1449_v21 = vadd.f32 %v1448_v48, %v1357_v36 }
 0x415   :  { %v1558_v22 = vpop.xlane.xlu1 %1557 }
 0x416   :  { %v1511_v32 = vmul.f32 %v1449_v21, %v2848_v20  ;;  %v1626_v20 = vmul.f32 1.442695, %v3547_v54  ;;  %v3560_v41 = vsub.f32 %v3433_v53, %v1558_v22 }
 0x418   :  { %v3543_v40 = vadd.f32 %v3369_v30, %v1511_v32  ;;  %v2013_v49 = vpop.eup %2012  ;;  %2014 = vpow2.f32 %v1626_v20  ;;  %v1632_v58 = vmul.f32 1.442695, %v3560_v41 }
 0x419   :  { %2016 = vpow2.f32 %v1628_v52 }
 0x41a   :  { %1587 = vmax.xlane.f32.xlu1 %v3543_v40 }
 0x41b   :  { %v1451_v37 = vpop.f32.mrf.mxu3 }
 0x41c   :  { %v1452_v3 = vadd.f32 %v1451_v37, %v1360_v60 }
 0x41d   :  { %v1560_v62 = vpop.xlane.xlu2 %1559 }
 0x41e   :  { %v1512_v45 = vmul.f32 %v1452_v3, %v2800_v27  ;;  %v2015_v53 = vpop.eup %2014 }
 0x41f   :  { %v2017_v11 = vpop.eup %2016 }
 0x420   :  { %v3553_v59 = vadd.f32 %v3369_v30, %v1512_v45 }
 0x422   :  { %1589 = vmax.xlane.f32.xlu2 %v3553_v59  ;;  %1680 = vadd.xlane.f32.xlu1 %v2013_v49 }
 0x423   :  { %v1454_v27 = vpop.f32.mrf.mxu3 }
 0x424   :  { %v1455_v16 = vadd.f32 %v1454_v27, %v1363_v38 }
 0x425   :  { %v1562_v25 = vpop.xlane.xlu0 %1561 }
 0x426   :  { %v1513_v34 = vmul.f32 %v1455_v16, %v2809_v46  ;;  %v3565_v19 = vsub.f32 %v3445_v23, %v1562_v25  ;;  %v3574_v46 = vsub.f32 %v3439_v42, %v1560_v62 }
 0x428   :  { %v1636_v0 = vmul.f32 1.442695, %v3565_v19  ;;  %v3570_v29 = vadd.f32 %v3369_v30, %v1513_v34  ;;  %v1634_v47 = vmul.f32 1.442695, %v3574_v46 }
 0x42a   :  { %2018 = vpow2.f32 %v1636_v0  ;;  %1591 = vmax.xlane.f32.xlu0 %v3570_v29  ;;  %1676 = vadd.xlane.f32.xlu2 %v2015_v53 }
 0x42b   :  { %2020 = vpow2.f32 %v1632_v58 }
 0x42d   :  { %v1564_v23 = vpop.xlane.xlu1 %1563 }
 0x42e   :  { %v3577_v17 = vsub.f32 %v3451_v61, %v1564_v23 }
 0x430   :  { %v2019_v63 = vpop.eup %2018  ;;  %v1638_v30 = vmul.f32 1.442695, %v3577_v17 }
 0x431   :  { %v2021_v5 = vpop.eup %2020  ;;  %1686 = vadd.xlane.f32.xlu1 %v2019_v63 }
 0x432   :  { %2022 = vpow2.f32 %v1638_v30  ;;  %1678 = vadd.xlane.f32.xlu0 %v2017_v11  ;;  %1682 = vadd.xlane.f32.xlu2 %v2021_v5 }
 0x433   :  { %2024 = vpow2.f32 %v1634_v47 }
 0x435   :  { %v1566_v51 = vpop.xlane.xlu2 %1565 }
 0x436   :  { %v3582_v42 = vsub.f32 %v3457_v44, %v1566_v51 }
 0x438   :  { %v2023_v39 = vpop.eup %2022  ;;  %v1640_v61 = vmul.f32 1.442695, %v3582_v42 }
 0x439   :  { %v2025_v33 = vpop.eup %2024 }
 0x43a   :  { %2026 = vpow2.f32 %v1640_v61  ;;  %1684 = vadd.xlane.f32.xlu0 %v2025_v33  ;;  %1688 = vadd.xlane.f32.xlu2 %v2023_v39 }
 0x43d   :  { %v1568_v24 = vpop.xlane.xlu0 %1567 }
 0x43e   :  { %v3586_v12 = vsub.f32 %v3463_v14, %v1568_v24 }
 0x440   :  { %v2027_v36 = vpop.eup %2026  ;;  %v1642_v48 = vmul.f32 1.442695, %v3586_v12 }
 0x442   :  { %2028 = vpow2.f32 %v1642_v48  ;;  %1690 = vadd.xlane.f32.xlu0 %v2027_v36 }
 0x445   :  { %v1570_v9 = vpop.xlane.xlu1 %1569 }
 0x446   :  { %v3590_v44 = vsub.f32 %v3469_v28, %v1570_v9 }
 0x448   :  { %v2029_v15 = vpop.eup %2028  ;;  %v1644_v21 = vmul.f32 1.442695, %v3590_v44 }
 0x449   :  { %1692 = vadd.xlane.f32.xlu1 %v2029_v15 }
 0x44a   :  { %2030 = vpow2.f32 %v1644_v21 }
 0x44d   :  { %v1572_v32 = vpop.xlane.xlu2 %1571 }
 0x44e   :  { %v3594_v31 = vsub.f32 %v3475_v43, %v1572_v32 }
 0x450   :  { %v2031_v14 = vpop.eup %2030  ;;  %v1646_v60 = vmul.f32 1.442695, %v3594_v31 }
 0x451   :  { %1694 = vadd.xlane.f32.xlu2 %v2031_v14 }
 0x452   :  { %2032 = vpow2.f32 %v1646_v60 }
 0x455   :  { %v1574_v37 = vpop.xlane.xlu0 %1573 }
 0x456   :  { %v3598_v3 = vsub.f32 %v3484_v7, %v1574_v37 }
 0x458   :  { %v2033_v28 = vpop.eup %2032  ;;  %v1648_v50 = vmul.f32 1.442695, %v3598_v3 }
 0x459   :  { %1696 = vadd.xlane.f32.xlu0 %v2033_v28 }
 0x45a   :  { %2034 = vpow2.f32 %v1648_v50 }
 0x45c   :  { %v1669_v8 = vpop.xlane.xlu1 %1668 }
 0x45d   :  { %2036 = vlog2.f32 %v1669_v8 }
 0x460   :  { %v2035_v45 = vpop.eup %2034 }
 0x461   :  { %1698 = vadd.xlane.f32.xlu1 %v2035_v45 }
 0x463   :  { %v2037_v43 = vpop.eup %2036 }
 0x464   :  { %v1719_v20 = vmul.f32 0.6931472, %v2037_v43  ;;  %v1576_v22 = vpop.xlane.xlu1 %1575  ;;  %v1671_v38 = vpop.xlane.xlu2 %1670 }
 0x465   :  { %v3602_v49 = vsub.f32 %v3498_v1, %v1576_v22  ;;  %2038 = vlog2.f32 %v1671_v38 }
 0x466   :  { %v1768_v7 = vsub.f32 %v3480_v56, %v1719_v20 }
 0x467   :  { %v1650_v27 = vmul.f32 1.442695, %v3602_v49 }
 0x468   :  { %1793 = vst [vmem:[#allocation7] sm:$0xff] %v1768_v7 }
 0x469   :  { %2040 = vpow2.f32 %v1650_v27 }
 0x46b   :  { %v2039_v16 = vpop.eup %2038 }
 0x46c   :  { %v1721_v52 = vmul.f32 0.6931472, %v2039_v16  ;;  %v1578_v25 = vpop.xlane.xlu2 %1577  ;;  %v1673_v34 = vpop.xlane.xlu0 %1672 }
 0x46d   :  { %v3607_v58 = vsub.f32 %v3508_v18, %v1578_v25  ;;  %2042 = vlog2.f32 %v1673_v34 }
 0x46e   :  { %v1769_v62 = vsub.f32 %v3489_v26, %v1721_v52 }
 0x46f   :  { %v2041_v0 = vpop.eup %2040  ;;  %v1652_v1 = vmul.f32 1.442695, %v3607_v58 }
 0x470   :  { %1794 = vst [vmem:[#allocation7 + $0x8] sm:$0xff] %v1769_v62  ;;  %1700 = vadd.xlane.f32.xlu2 %v2041_v0 }
 0x471   :  { %2044 = vpow2.f32 %v1652_v1 }
 0x473   :  { %v2043_v56 = vpop.eup %2042 }
 0x474   :  { %v1723_v53 = vmul.f32 0.6931472, %v2043_v56  ;;  %v1675_v23 = vpop.xlane.xlu1 %1674  ;;  %v1580_v11 = vpop.xlane.xlu0 %1579 }
 0x475   :  { %2046 = vlog2.f32 %v1675_v23  ;;  %v3612_v47 = vsub.f32 %v3515_v13, %v1580_v11 }
 0x476   :  { %v1770_v18 = vsub.f32 %v3495_v55, %v1723_v53 }
 0x477   :  { %v2045_v63 = vpop.eup %2044  ;;  %v1654_v30 = vmul.f32 1.442695, %v3612_v47 }
 0x478   :  { %1795 = vst [vmem:[#allocation7 + $0x10] sm:$0xff] %v1770_v18  ;;  %1702 = vadd.xlane.f32.xlu0 %v2045_v63 }
 0x479   :  { %2048 = vpow2.f32 %v1654_v30 }
 0x47b   :  { %v2047_v26 = vpop.eup %2046 }
 0x47c   :  { %v1725_v5 = vmul.f32 0.6931472, %v2047_v26  ;;  %v1582_v51 = vpop.xlane.xlu1 %1581 }
 0x47d   :  { %v3617_v39 = vsub.f32 %v3522_v4, %v1582_v51  ;;  %v1584_v61 = vpop.xlane.xlu2 %1583 }
 0x47e   :  { %v1771_v33 = vsub.f32 %v3505_v35, %v1725_v5  ;;  %v3621_v13 = vsub.f32 %v3526_v57, %v1584_v61 }
 0x47f   :  { %v2049_v24 = vpop.eup %2048  ;;  %v1656_v55 = vmul.f32 1.442695, %v3617_v39 }
 0x480   :  { %1796 = vst [vmem:[#allocation7 + $0x18] sm:$0xff] %v1771_v33  ;;  %v1658_v36 = vmul.f32 1.442695, %v3621_v13  ;;  %1704 = vadd.xlane.f32.xlu1 %v2049_v24 }
 0x481   :  { %2050 = vpow2.f32 %v1656_v55 }
 0x482   :  { %2052 = vpow2.f32 %v1658_v36 }
 0x485   :  { %v1586_v48 = vpop.xlane.xlu0 %1585 }
 0x486   :  { %v3626_v9 = vsub.f32 %v3533_v10, %v1586_v48 }
 0x487   :  { %v2051_v4 = vpop.eup %2050 }
 0x488   :  { %v2053_v15 = vpop.eup %2052  ;;  %v1660_v35 = vmul.f32 1.442695, %v3626_v9  ;;  %1706 = vadd.xlane.f32.xlu2 %v2051_v4 }
 0x489   :  { %1708 = vadd.xlane.f32.xlu0 %v2053_v15 }
 0x48a   :  { %2054 = vpow2.f32 %v1660_v35 }
 0x48d   :  { %v1588_v57 = vpop.xlane.xlu1 %1587 }
 0x48e   :  { %v3630_v21 = vsub.f32 %v3543_v40, %v1588_v57 }
 0x490   :  { %v2055_v32 = vpop.eup %2054  ;;  %v1662_v14 = vmul.f32 1.442695, %v3630_v21 }
 0x491   :  { %1710 = vadd.xlane.f32.xlu1 %v2055_v32 }
 0x492   :  { %2056 = vpow2.f32 %v1662_v14 }
 0x495   :  { %v1590_v60 = vpop.xlane.xlu2 %1589  ;;  %v1681_v37 = vpop.xlane.xlu1 %1680 }
 0x496   :  { %v3634_v10 = vsub.f32 %v3553_v59, %v1590_v60  ;;  %2058 = vlog2.f32 %v1681_v37 }
 0x498   :  { %v2057_v28 = vpop.eup %2056  ;;  %v1664_v50 = vmul.f32 1.442695, %v3634_v10 }
 0x499   :  { %1712 = vadd.xlane.f32.xlu2 %v2057_v28 }
 0x49a   :  { %2060 = vpow2.f32 %v1664_v50 }
 0x49c   :  { %v2059_v8 = vpop.eup %2058 }
 0x49d   :  { %v1731_v45 = vmul.f32 0.6931472, %v2059_v8  ;;  %v1677_v40 = vpop.xlane.xlu2 %1676  ;;  %v1592_v43 = vpop.xlane.xlu0 %1591 }
 0x49e   :  { %2062 = vlog2.f32 %v1677_v40  ;;  %v3638_v20 = vsub.f32 %v3570_v29, %v1592_v43 }
 0x49f   :  { %v1774_v22 = vsub.f32 %v3537_v2, %v1731_v45 }
 0x4a0   :  { %v2061_v38 = vpop.eup %2060  ;;  %v1666_v59 = vmul.f32 1.442695, %v3638_v20 }
 0x4a1   :  { %1799 = vst [vmem:[#allocation7 + $0x30] sm:$0xff] %v1774_v22  ;;  %1714 = vadd.xlane.f32.xlu0 %v2061_v38 }
 0x4a2   :  { %2064 = vpow2.f32 %v1666_v59 }
 0x4a4   :  { %v2063_v7 = vpop.eup %2062  ;;  %v1687_v27 = vpop.xlane.xlu1 %1686 }
 0x4a5   :  { %v1727_v16 = vmul.f32 0.6931472, %v2063_v7  ;;  %2066 = vlog2.f32 %v1687_v27  ;;  %v1683_v52 = vpop.xlane.xlu2 %1682  ;;  %v1679_v25 = vpop.xlane.xlu0 %1678 }
 0x4a6   :  { %2068 = vlog2.f32 %v1683_v52 }
 0x4a7   :  { %v1772_v34 = vsub.f32 %v3547_v54, %v1727_v16  ;;  %2070 = vlog2.f32 %v1679_v25 }
 0x4a8   :  { %v2065_v29 = vpop.eup %2064 }
 0x4a9   :  { %1797 = vst [vmem:[#allocation7 + $0x20] sm:$0xff] %v1772_v34  ;;  %1716 = vadd.xlane.f32.xlu1 %v2065_v29 }
 0x4ab   :  { %v2067_v2 = vpop.eup %2066 }
 0x4ac   :  { %v2069_v62 = vpop.eup %2068  ;;  %v1737_v0 = vmul.f32 0.6931472, %v2067_v2 }
 0x4ad   :  { %v2071_v1 = vpop.eup %2070  ;;  %v1733_v56 = vmul.f32 0.6931472, %v2069_v62  ;;  %v1689_v53 = vpop.xlane.xlu2 %1688 }
 0x4ae   :  { %v1685_v23 = vpop.xlane.xlu0 %1684  ;;  %v1777_v11 = vsub.f32 %v3565_v19, %v1737_v0  ;;  %v1729_v18 = vmul.f32 0.6931472, %v2071_v1  ;;  %2072 = vlog2.f32 %v1689_v53 }
 0x4af   :  { %v1775_v63 = vsub.f32 %v3560_v41, %v1733_v56  ;;  %2074 = vlog2.f32 %v1685_v23 }
 0x4b0   :  { %1802 = vst [vmem:[#allocation7 + $0x48] sm:$0xff] %v1777_v11  ;;  %v1773_v54 = vsub.f32 %v3556_v6, %v1729_v18 }
 0x4b1   :  { %1800 = vst [vmem:[#allocation7 + $0x38] sm:$0xff] %v1775_v63 }
 0x4b2   :  { %1798 = vst [vmem:[#allocation7 + $0x28] sm:$0xff] %v1773_v54 }
 0x4b4   :  { %v2073_v30 = vpop.eup %2072 }
 0x4b5   :  { %v2075_v26 = vpop.eup %2074  ;;  %v1739_v5 = vmul.f32 0.6931472, %v2073_v30 }
 0x4b6   :  { %v1691_v51 = vpop.xlane.xlu0 %1690  ;;  %v1735_v61 = vmul.f32 0.6931472, %v2075_v26 }
 0x4b7   :  { %2076 = vlog2.f32 %v1691_v51  ;;  %v1778_v33 = vsub.f32 %v3577_v17, %v1739_v5 }
 0x4b8   :  { %v1776_v19 = vsub.f32 %v3574_v46, %v1735_v61 }
 0x4b9   :  { %1803 = vst [vmem:[#allocation7 + $0x50] sm:$0xff] %v1778_v33 }
 0x4ba   :  { %1801 = vst [vmem:[#allocation7 + $0x40] sm:$0xff] %v1776_v19 }
 0x4bc   :  { %v1693_v41 = vpop.xlane.xlu1 %1692 }
 0x4bd   :  { %v2077_v24 = vpop.eup %2076  ;;  %2078 = vlog2.f32 %v1693_v41 }
 0x4be   :  { %v1741_v55 = vmul.f32 0.6931472, %v2077_v24 }
 0x4c0   :  { %v1779_v6 = vsub.f32 %v3582_v42, %v1741_v55 }
 0x4c2   :  { %1804 = vst [vmem:[#allocation7 + $0x58] sm:$0xff] %v1779_v6 }
 0x4c3   :  { %v2079_v36 = vpop.eup %2078 }
 0x4c4   :  { %v1743_v48 = vmul.f32 0.6931472, %v2079_v36  ;;  %v1695_v4 = vpop.xlane.xlu2 %1694 }
 0x4c5   :  { %2080 = vlog2.f32 %v1695_v4 }
 0x4c6   :  { %v1780_v15 = vsub.f32 %v3586_v12, %v1743_v48 }
 0x4c8   :  { %1805 = vst [vmem:[#allocation7 + $0x60] sm:$0xff] %v1780_v15 }
 0x4cb   :  { %v2081_v35 = vpop.eup %2080 }
 0x4cc   :  { %v1745_v17 = vmul.f32 0.6931472, %v2081_v35  ;;  %v1697_v57 = vpop.xlane.xlu0 %1696 }
 0x4cd   :  { %2082 = vlog2.f32 %v1697_v57 }
 0x4ce   :  { %v1781_v46 = vsub.f32 %v3590_v44, %v1745_v17 }
 0x4d0   :  { %1806 = vst [vmem:[#allocation7 + $0x68] sm:$0xff] %v1781_v46 }
 0x4d3   :  { %v2083_v32 = vpop.eup %2082 }
 0x4d4   :  { %v1747_v14 = vmul.f32 0.6931472, %v2083_v32  ;;  %v1699_v60 = vpop.xlane.xlu1 %1698 }
 0x4d5   :  { %2084 = vlog2.f32 %v1699_v60 }
 0x4d6   :  { %v1782_v42 = vsub.f32 %v3594_v31, %v1747_v14 }
 0x4d8   :  { %1807 = vst [vmem:[#allocation7 + $0x70] sm:$0xff] %v1782_v42 }
 0x4db   :  { %v2085_v37 = vpop.eup %2084 }
 0x4dc   :  { %v1749_v28 = vmul.f32 0.6931472, %v2085_v37 }
 0x4de   :  { %v1783_v50 = vsub.f32 %v3598_v3, %v1749_v28 }
 0x4e0   :  { %1808 = vst [vmem:[#allocation7 + $0x78] sm:$0xff] %v1783_v50 }
 0x4e3   :  { %v1701_v12 = vpop.xlane.xlu2 %1700 }
 0x4e4   :  { %2086 = vlog2.f32 %v1701_v12 }
 0x4ea   :  { %v2087_v8 = vpop.eup %2086 }
 0x4eb   :  { %v1751_v45 = vmul.f32 0.6931472, %v2087_v8  ;;  %v1703_v40 = vpop.xlane.xlu0 %1702 }
 0x4ec   :  { %2088 = vlog2.f32 %v1703_v40 }
 0x4ed   :  { %v1784_v44 = vsub.f32 %v3602_v49, %v1751_v45 }
 0x4ef   :  { %1809 = vst [vmem:[#allocation7 + $0x80] sm:$0xff] %v1784_v44 }
 0x4f2   :  { %v2089_v43 = vpop.eup %2088 }
 0x4f3   :  { %v1753_v22 = vmul.f32 0.6931472, %v2089_v43  ;;  %v1705_v38 = vpop.xlane.xlu1 %1704 }
 0x4f4   :  { %2090 = vlog2.f32 %v1705_v38 }
 0x4f5   :  { %v1785_v31 = vsub.f32 %v3607_v58, %v1753_v22 }
 0x4f7   :  { %1810 = vst [vmem:[#allocation7 + $0x88] sm:$0xff] %v1785_v31 }
 0x4fa   :  { %v2091_v59 = vpop.eup %2090 }
 0x4fb   :  { %v1755_v7 = vmul.f32 0.6931472, %v2091_v59  ;;  %v1707_v3 = vpop.xlane.xlu2 %1706 }
 0x4fc   :  { %2092 = vlog2.f32 %v1707_v3  ;;  %v1709_v27 = vpop.xlane.xlu0 %1708 }
 0x4fd   :  { %v1786_v16 = vsub.f32 %v3612_v47, %v1755_v7  ;;  %2094 = vlog2.f32 %v1709_v27 }
 0x4ff   :  { %1811 = vst [vmem:[#allocation7 + $0x90] sm:$0xff] %v1786_v16 }
 0x502   :  { %v2093_v52 = vpop.eup %2092 }
 0x503   :  { %v2095_v25 = vpop.eup %2094  ;;  %v1757_v49 = vmul.f32 0.6931472, %v2093_v52 }
 0x504   :  { %v1759_v34 = vmul.f32 0.6931472, %v2095_v25  ;;  %v1711_v29 = vpop.xlane.xlu1 %1710 }
 0x505   :  { %v1787_v2 = vsub.f32 %v3617_v39, %v1757_v49  ;;  %2096 = vlog2.f32 %v1711_v29 }
 0x506   :  { %v1788_v58 = vsub.f32 %v3621_v13, %v1759_v34 }
 0x507   :  { %1812 = vst [vmem:[#allocation7 + $0x98] sm:$0xff] %v1787_v2 }
 0x508   :  { %1813 = vst [vmem:[#allocation7 + $0xa0] sm:$0xff] %v1788_v58 }
 0x50b   :  { %v2097_v62 = vpop.eup %2096 }
 0x50c   :  { %v1761_v0 = vmul.f32 0.6931472, %v2097_v62  ;;  %v1713_v1 = vpop.xlane.xlu2 %1712 }
 0x50d   :  { %2098 = vlog2.f32 %v1713_v1 }
 0x50e   :  { %v1789_v47 = vsub.f32 %v3626_v9, %v1761_v0 }
 0x510   :  { %1814 = vst [vmem:[#allocation7 + $0xa8] sm:$0xff] %v1789_v47 }
 0x513   :  { %v2099_v56 = vpop.eup %2098 }
 0x514   :  { %v1763_v53 = vmul.f32 0.6931472, %v2099_v56  ;;  %v1715_v23 = vpop.xlane.xlu0 %1714 }
 0x515   :  { %2100 = vlog2.f32 %v1715_v23 }
 0x516   :  { %v1790_v11 = vsub.f32 %v3630_v21, %v1763_v53 }
 0x518   :  { %1815 = vst [vmem:[#allocation7 + $0xb0] sm:$0xff] %v1790_v11 }
 0x51b   :  { %v2101_v39 = vpop.eup %2100 }
 0x51c   :  { %v1765_v18 = vmul.f32 0.6931472, %v2101_v39  ;;  %v1717_v63 = vpop.xlane.xlu1 %1716 }
 0x51d   :  { %2102 = vlog2.f32 %v1717_v63 }
 0x51e   :  { %v1791_v13 = vsub.f32 %v3634_v10, %v1765_v18 }
 0x520   :  { %1816 = vst [vmem:[#allocation7 + $0xb8] sm:$0xff] %v1791_v13 }
 0x523   :  { %v2103_v9 = vpop.eup %2102 }
 0x524   :  { %v1767_v54 = vmul.f32 0.6931472, %v2103_v9 }
 0x526   :  { %v1792_v21 = vsub.f32 %v3638_v20, %v1767_v54 }
 0x528   :  { %1817 = vst [vmem:[#allocation7 + $0xc0] sm:$0xff] %v1792_v21 }
 0x529   :  { %1830 = dma.vmem_to_hbm [thread:$0]  %s1823_s8, 3200, %s1825_s11, [#allocation6], %s2161_s2, %s2161_s2, %s2162_s12  }
 0x52a   :  { %2154 = dma.done.wait [#allocation6], 3200  }
 0x52b   :  { %2155 = vsyncadd [#allocation6], 4294964096 }
 0x52c   :  { %1835 = vsyncpa [#allocation5], 1 }
 0x52d   :  { %1836 = vsyncpa [#allocation6], 1 }

</bundles_post_ra>
